<compile_context>
chip_gen: v5e
topology: v5e:2x2
jax: 0.10.0
libtpu: 0.0.40
codegen_flags: <defaults>
</compile_context>

<pallas_src>
import jax
import jax.numpy as jnp
from jax.experimental import pallas as pl
from jax.experimental.pallas import tpu as pltpu  # noqa: F401  (TPU backend)

# 0.044715 * 0.7978845608028654 folded into a single constant.
_GELU_C = 0.044715 * 0.7978845608028654


def _linear_gelu_kernel(x_ref, w_ref, b_ref, o_ref):
    # MXU matmul, f32 accumulation, explicit highest precision (no bf16 demotion).
    y = jnp.dot(
        x_ref[...],
        w_ref[...],
        preferred_element_type=jnp.float32,
        precision=jax.lax.Precision.HIGHEST,
    )
    y = y + b_ref[...]                       # (M, N) + (1, N) broadcast

    y2 = y * y
    t = jnp.tanh(_GELU_C * (y2 * y))         # EUP; single folded constant
    o_ref[...] = ((0.5 * y) * (t + 1.0)).astype(o_ref.dtype)


def linear_gelu(x, w, b):
    """x: (M, K) f32, w: (K, N) f32, b: (N,) f32 -> (M, N) f32."""
    M, K = x.shape
    K2, N = w.shape
    assert K == K2
    b2 = b.reshape(1, N)                     # 2-D layout for the kernel

    return pl.pallas_call(
        _linear_gelu_kernel,
        out_shape=jax.ShapeDtypeStruct((M, N), jnp.float32),
        in_specs=[
            pl.BlockSpec((M, K), lambda: (0, 0)),   # full array (no grid)
            pl.BlockSpec((K, N), lambda: (0, 0)),
            pl.BlockSpec((1, N), lambda: (0, 0)),
        ],
        out_specs=pl.BlockSpec((M, N), lambda: (0, 0)),
    )(x, w, b2)


def reference(x, w, b):
    y = jnp.dot(x, w, precision=jax.lax.Precision.HIGHEST) + b
    v12 = y * 0.5
    v13 = y * y * y * 0.044715
    v14 = jnp.tanh(v13 * 0.7978845608028654) + 1.0
    return v12 * v14


if __name__ == "__main__":
    key = jax.random.PRNGKey(0)
    k_x, k_w, k_b = jax.random.split(key, 3)

    M, K, N = 10, 200, 300
    x = jax.random.normal(k_x, (M, K), dtype=jnp.float32)

    # Deterministic parameter init mimicking nn.Linear's U(-1/sqrt(K), 1/sqrt(K)).
    bound = 1.0 / (K ** 0.5)
    w = jax.random.uniform(k_w, (K, N), minval=-bound, maxval=bound,
                           dtype=jnp.float32)
    b = jax.random.uniform(k_b, (N,), minval=-bound, maxval=bound,
                           dtype=jnp.float32)

    out = linear_gelu(x, w, b)
    out = jax.block_until_ready(out)

    ref = reference(x, w, b)
    assert out.shape == (M, N)
    assert jnp.allclose(out, ref, atol=1e-4, rtol=1e-4)

    print("KERNEL_OK")
</pallas_src>

<mosaic_0001>
module attributes {stable_mosaic.version = 11 : i64} {
  func.func @_linear_gelu_kernel(%arg0: memref<10x200xf32, #tpu.memory_space<vmem>>, %arg1: memref<200x300xf32, #tpu.memory_space<vmem>>, %arg2: memref<1x300xf32, #tpu.memory_space<vmem>>, %arg3: memref<10x300xf32, #tpu.memory_space<vmem>>) attributes {dimension_semantics = [], scalar_prefetch = 0 : i64, scratch_operands = 0 : i64, tpu.core_type = #tpu.core_type<tc>} {
    %c0 = arith.constant 0 : index
    %c0_0 = arith.constant 0 : index
    %0 = vector.load %arg0[%c0, %c0_0] : memref<10x200xf32, #tpu.memory_space<vmem>>, vector<10x200xf32>
    %c0_1 = arith.constant 0 : index
    %c0_2 = arith.constant 0 : index
    %1 = vector.load %arg1[%c0_1, %c0_2] : memref<200x300xf32, #tpu.memory_space<vmem>>, vector<200x300xf32>
    %cst = arith.constant dense<0.000000e+00> : vector<10x300xf32>
    %2 = tpu.matmul %0, %1, %cst {dimension_numbers = #tpu.dot_dimension_numbers<[1], [0], [0], [1], [0, 0, 1, 1], [], []>, precision = #tpu.contract_precision<fp32>} : vector<10x200xf32>, vector<200x300xf32>, vector<10x300xf32> -> vector<10x300xf32>
    %c0_3 = arith.constant 0 : index
    %c0_4 = arith.constant 0 : index
    %3 = vector.load %arg2[%c0_3, %c0_4] : memref<1x300xf32, #tpu.memory_space<vmem>>, vector<1x300xf32>
    %4 = vector.broadcast %3 : vector<1x300xf32> to vector<10x300xf32>
    %5 = arith.addf %2, %4 : vector<10x300xf32>
    %6 = arith.mulf %5, %5 : vector<10x300xf32>
    %7 = arith.mulf %6, %5 : vector<10x300xf32>
    %cst_5 = arith.constant 0.0356774069 : f32
    %8 = vector.broadcast %cst_5 : f32 to vector<10x300xf32>
    %9 = arith.mulf %8, %7 : vector<10x300xf32>
    %10 = math.tanh %9 : vector<10x300xf32>
    %cst_6 = arith.constant 5.000000e-01 : f32
    %11 = vector.broadcast %cst_6 : f32 to vector<10x300xf32>
    %12 = arith.mulf %11, %5 : vector<10x300xf32>
    %cst_7 = arith.constant 1.000000e+00 : f32
    %13 = vector.broadcast %cst_7 : f32 to vector<10x300xf32>
    %14 = arith.addf %10, %13 : vector<10x300xf32>
    %15 = arith.mulf %12, %14 : vector<10x300xf32>
    %c0_8 = arith.constant 0 : index
    %c0_9 = arith.constant 0 : index
    %16 = vector.load %arg3[%c0_8, %c0_9] : memref<10x300xf32, #tpu.memory_space<vmem>>, vector<10x300xf32>
    tpu.vector_store %arg3[%c0_8, %c0_9], %15 {strides = array<i32>} : memref<10x300xf32, #tpu.memory_space<vmem>>, vector<10x300xf32>,
    return
  }
}

</mosaic_0001>

<bundles_post_ra>
// kernel: tpu_custom_call.1
= control target key start
LH: loop header
LB: loop body
LE: loop exit
PB: predicated region body
PF: predicated region fallthrough
CT: control target
= control target key end

     0   :  { %8 = vsyncpa [#allocation3], 0  ;;  %s3663_s0 = inlined_call_operand.hbm [shape: f32[10,200], index: 0, kind: input, shape index: {}]   ;;  %s3664_s1 = inlined_call_operand.hbm [shape: f32[200,300], index: 1, kind: input, shape index: {}]   ;;  %s3665_s2 = inlined_call_operand.hbm [shape: f32[1,300], index: 2, kind: input, shape index: {}]   ;;  %s3666_s3 = inlined_call_operand.hbm [shape: f32[10,300], index: 3, kind: output, shape index: {}]  }
   0x1   :  { %9 = vsyncpa [#allocation6], 0  ;;  %s28_s14 = sshll.u32 %s3664_s1, 4  ;;  %s29_s14 = int_to_ptr.hbm [resolvable:$true] %s28_s14 }
   0x2   :  { %10 = vsyncpa [#allocation4], 0  ;;  %s2323_s15 = smov [#allocation5]   ;;  %s15_s19 = sshll.u32 %s3663_s0, 4  ;;  %s16_s19 = int_to_ptr.hbm [resolvable:$true] %s15_s19 }
   0x3   :  { %s30_s16 = sshll.u32 %s2323_s15, 4  ;;  %s2324_s20 = smov 384   ;;  %s31_s16 = int_to_ptr.vmem [resolvable:$true] %s30_s16 }
   0x4   :  { %s2325_s21 = smov 24   ;;  %s2326_s22 = smov [#allocation2]  }
   0x5   :  { %36 = dma.hbm_to_vmem [thread:$0]  %s29_s14, 9600, %s31_s16, [#allocation6], %s2324_s20, %s2324_s20, %s2325_s21  }
   0x6   :  { %s17_s23 = sshll.u32 %s2326_s22, 4  ;;  %s2327_s1 = smov 256   ;;  %s18_s23 = int_to_ptr.vmem [resolvable:$true] %s17_s23 }
   0x7   :  { %s2328_s24 = smov 16   ;;  %s42_s27 = sshll.u32 %s3665_s2, 4  ;;  %s43_s27 = int_to_ptr.hbm [resolvable:$true] %s42_s27 }
   0x8   :  { %23 = dma.hbm_to_vmem [thread:$0]  %s16_s19, 512, %s18_s23, [#allocation3], %s2327_s1, %s2327_s1, %s2328_s24  }
   0x9   :  { %s2329_s28 = smov [#allocation7]  }
   0xa   :  { %s44_s0 = sshll.u32 %s2329_s28, 4  ;;  %s45_s0 = int_to_ptr.vmem [resolvable:$true] %s44_s0 }
   0xb   :  { %47 = dma.hbm_to_vmem [thread:$0]  %s43_s27, 48, %s45_s0, [#allocation6]  }
   0xc   :  { %2317 = dma.done.wait [#allocation3], 512  }
   0xd   :  { %2318 = vsyncadd [#allocation3], 4294966784 }
   0xe   :  { %2319 = dma.done.wait [#allocation6], 9648  }
   0xf   :  { %2320 = vsyncadd [#allocation6], 4294957648  ;;  %v109_v0 = vld [vmem:[#allocation5 + $0x168] sm:$0xff]  ;;  %v106_v1 = vld [vmem:[#allocation5 + $0x150] sm:$0xff]  ;;  %vm147_vm0 = vcmask 588800   ;;  %vm2157_vm1 = vcmask 359424  }
  0x10   :  { %v103_v2 = vld [vmem:[#allocation5 + $0x138] sm:$0xff]  ;;  %v2363_v3 = vand.u32 4294901760, %v109_v0  ;;  %v2365_v4 = vand.u32 4294901760, %v106_v1  ;;  %v100_v6 = vld [vmem:[#allocation5 + $0x120] sm:$0xff]  ;;  %v97_v7 = vld [vmem:[#allocation5 + $0x108] sm:$0xff]  ;;  %s2330_s2 = smov [#allocation8]  }
  0x11   :  { %v2367_v5 = vand.u32 4294901760, %v103_v2  ;;  %v94_v8 = vld [vmem:[#allocation5 + $0xf0] sm:$0xff]  ;;  %v2369_v9 = vand.u32 4294901760, %v100_v6  ;;  %v2371_v10 = vand.u32 4294901760, %v97_v7  ;;  %v91_v12 = vld [vmem:[#allocation5 + $0xd8] sm:$0xff]  ;;  %v88_v13 = vld [vmem:[#allocation5 + $0xc0] sm:$0xff] }
  0x12   :  { %v2373_v11 = vand.u32 4294901760, %v94_v8  ;;  %155 = vmatpush.msra.mxu0 %v2363_v3  ;;  %v2377_v14 = vsub.f32 %v109_v0, %v2363_v3  ;;  %v2380_v15 = vsub.f32 %v106_v1, %v2365_v4  ;;  %368 = vmatpush.msra.mxu3 %v2363_v3  ;;  %v2386_v17 = vand.u32 4294901760, %v91_v12  ;;  %v85_v18 = vld [vmem:[#allocation5 + $0xa8] sm:$0xff]  ;;  %v82_v26 = vld [vmem:[#allocation5 + $0x90] sm:$0xff]  ;;  %v79_v36 = vld [vmem:[#allocation5 + $0x78] sm:$0xff]  ;;  %s2167_s29 = sshll.u32 %s2330_s2, 4  ;;  %s2168_s29 = int_to_ptr.vmem [resolvable:$true] %s2167_s29 }
  0x13   :  { %v2384_v16 = vsub.f32 %v103_v2, %v2367_v5  ;;  %v2389_v19 = vsub.f32 %v100_v6, %v2369_v9  ;;  %v2392_v20 = vsub.f32 %v97_v7, %v2371_v10  ;;  %v2394_v21 = vand.u32 4294901760, %v88_v13  ;;  %v76_v42 = vld [vmem:[#allocation5 + $0x60] sm:$0xff]  ;;  %v73_v48 = vld [vmem:[#allocation5 + $0x48] sm:$0xff]  ;;  %v70_v54 = vld [vmem:[#allocation5 + $0x30] sm:$0xff]  ;;  %s2169_s5 = sshll.u32 %s3666_s3, 4  ;;  %s2170_s5 = int_to_ptr.hbm [resolvable:$true] %s2169_s5 }
  0x14   :  { %157 = vmatpush.msra.mxu0 %v2365_v4  ;;  %310 = vmatpush.msra.mxu2 %v2377_v14  ;;  %v205_v22 = vand.u32 4294901760, %v2377_v14  ;;  %v211_v23 = vand.u32 4294901760, %v2380_v15  ;;  %v2402_v25 = vsub.f32 %v94_v8, %v2373_v11  ;;  %v2407_v28 = vsub.f32 %v91_v12, %v2386_v17  ;;  %v136_v59 = vld [vmem:[#allocation5 + $0x240] sm:$0xff]  ;;  %v67_v61 = vld [vmem:[#allocation5 + $0x18] sm:$0xff]  ;;  %v133_v2 = vld [vmem:[#allocation5 + $0x228] sm:$0xff] }
  0x15   :  { %v3682_v24 = vand.u32 4294901760, %v2384_v16  ;;  %370 = vmatpush.msra.mxu3 %v2365_v4  ;;  %v3679_v27 = vand.u32 4294901760, %v2389_v19  ;;  %v2409_v29 = vand.u32 4294901760, %v85_v18  ;;  %v3678_v33 = vand.u32 4294901760, %v2392_v20  ;;  %v64_v7 = vld [vmem:[#allocation5] sm:$0xff] }
  0x16   :  { %159 = vmatpush.msra.mxu0 %v2367_v5  ;;  %313 = vmatpush.msra.mxu2 %v2380_v15  ;;  %v206_v30 = vsub.f32 %v2377_v14, %v205_v22  ;;  %v212_v31 = vsub.f32 %v2380_v15, %v211_v23  ;;  %v2425_v34 = vsub.f32 %v88_v13, %v2394_v21  ;;  %v2427_v35 = vand.u32 4294901760, %v82_v26 }
  0x17   :  { %v218_v32 = vsub.f32 %v2384_v16, %v3682_v24  ;;  %372 = vmatpush.msra.mxu3 %v2367_v5  ;;  %v224_v39 = vsub.f32 %v2389_v19, %v3679_v27  ;;  %v3676_v40 = vand.u32 4294901760, %v2402_v25  ;;  %v3674_v41 = vand.u32 4294901760, %v2407_v28  ;;  %v115_v27 = vld [vmem:[#allocation5 + $0x198] sm:$0xff]  ;;  %v61_v24 = vld [vmem:[#allocation2 + $0x8] sm:$0xff] }
  0x18   :  { %161 = vmatpush.msra.mxu0 %v2369_v9  ;;  %316 = vmatpush.msra.mxu2 %v2384_v16  ;;  %v207_v37 = vand.u32 4294901760, %v206_v30  ;;  %v213_v38 = vand.u32 4294901760, %v212_v31  ;;  %v230_v44 = vsub.f32 %v2392_v20, %v3678_v33  ;;  %v2442_v45 = vsub.f32 %v85_v18, %v2409_v29 }
  0x19   :  { %374 = vmatpush.msra.mxu3 %v2369_v9  ;;  %v219_v43 = vand.u32 4294901760, %v218_v32  ;;  %v2444_v46 = vand.u32 4294901760, %v79_v36  ;;  %v3672_v47 = vand.u32 4294901760, %v2425_v34  ;;  %v225_v49 = vand.u32 4294901760, %v224_v39  ;;  %v130_v39 = vld [vmem:[#allocation5 + $0x210] sm:$0xff] }
  0x1a   :  { %163 = vmatpush.msra.mxu0 %v2371_v10  ;;  %208 = vmatpush.msra.mxu1 %v207_v37  ;;  %v236_v50 = vsub.f32 %v2402_v25, %v3676_v40  ;;  %v2454_v51 = vsub.f32 %v82_v26, %v2427_v35  ;;  %v2456_v52 = vand.u32 4294901760, %v76_v42  ;;  %v242_v53 = vsub.f32 %v2407_v28, %v3674_v41 }
  0x1b   :  { %319 = vmatpush.msra.mxu2 %v2389_v19  ;;  %376 = vmatpush.msra.mxu3 %v2371_v10  ;;  %v231_v55 = vand.u32 4294901760, %v230_v44  ;;  %v2465_v56 = vsub.f32 %v79_v36, %v2444_v46  ;;  %v2467_v57 = vand.u32 4294901760, %v73_v48  ;;  %v3671_v58 = vand.u32 4294901760, %v2442_v45 }
  0x1c   :  { %165 = vmatpush.msra.mxu0 %v2373_v11  ;;  %214 = vmatpush.msra.mxu1 %v213_v38  ;;  %v248_v60 = vsub.f32 %v2425_v34, %v3672_v47  ;;  %v237_v62 = vand.u32 4294901760, %v236_v50  ;;  %v2477_v63 = vsub.f32 %v76_v42, %v2456_v52  ;;  %v2479_v0 = vand.u32 4294901760, %v70_v54  ;;  %v127_v50 = vld [vmem:[#allocation5 + $0x1f8] sm:$0xff] }
  0x1d   :  { %322 = vmatpush.msra.mxu2 %v2392_v20  ;;  %378 = vmatpush.msra.mxu3 %v2373_v11  ;;  %v3669_v1 = vand.u32 4294901760, %v2454_v51  ;;  %v243_v6 = vand.u32 4294901760, %v242_v53  ;;  %v2484_v8 = vand.u32 4294901760, %v136_v59  ;;  %v254_v12 = vsub.f32 %v2442_v45, %v3671_v58  ;;  %v60_v58 = vld [vmem:[#allocation2] sm:$0xff] }
  0x1e   :  { %167 = vmatpush.msra.mxu0 %v2386_v17  ;;  %220 = vmatpush.msra.mxu1 %v219_v43  ;;  %v2491_v13 = vsub.f32 %v73_v48, %v2467_v57  ;;  %v2493_v18 = vand.u32 4294901760, %v67_v61  ;;  %v3668_v26 = vand.u32 4294901760, %v2465_v56  ;;  %v249_v30 = vand.u32 4294901760, %v248_v60 }
  0x1f   :  { %325 = vmatpush.msra.mxu2 %v2402_v25  ;;  %380 = vmatpush.msra.mxu3 %v2386_v17  ;;  %v2498_v31 = vand.u32 4294901760, %v133_v2  ;;  %v260_v32 = vsub.f32 %v2454_v51, %v3669_v1  ;;  %v2505_v36 = vsub.f32 %v70_v54, %v2479_v0  ;;  %v2507_v37 = vand.u32 4294901760, %v64_v7 }
  0x20   :  { %169 = vmatpush.msra.mxu0 %v2394_v21  ;;  %226 = vmatpush.msra.mxu1 %v225_v49  ;;  %v3667_v38 = vand.u32 4294901760, %v2477_v63  ;;  %v2513_v42 = vsub.f32 %v136_v59, %v2484_v8  ;;  %v255_v43 = vand.u32 4294901760, %v254_v12  ;;  %v266_v44 = vsub.f32 %v2465_v56, %v3668_v26 }
  0x21   :  { %328 = vmatpush.msra.mxu2 %v2407_v28  ;;  %382 = vmatpush.msra.mxu3 %v2394_v21  ;;  %v2520_v48 = vsub.f32 %v67_v61, %v2493_v18  ;;  %v3670_v49 = vand.u32 4294901760, %v2491_v13  ;;  %v2525_v53 = vand.u32 4294901760, %v130_v39  ;;  %v2528_v54 = vsub.f32 %v133_v2, %v2498_v31 }
  0x22   :  { %171 = vmatpush.msra.mxu0 %v2409_v29  ;;  %232 = vmatpush.msra.mxu1 %v231_v55  ;;  %v261_v55 = vand.u32 4294901760, %v260_v32  ;;  %v272_v59 = vsub.f32 %v2477_v63, %v3667_v38  ;;  %v2535_v60 = vsub.f32 %v64_v7, %v2507_v37  ;;  %v3673_v61 = vand.u32 4294901760, %v2505_v36  ;;  %v121_v32 = vld [vmem:[#allocation5 + $0x1c8] sm:$0xff] }
  0x23   :  { %331 = vmatpush.msra.mxu2 %v2425_v34  ;;  %384 = vmatpush.msra.mxu3 %v2409_v29  ;;  %v3675_v2 = vand.u32 4294901760, %v2513_v42  ;;  %v267_v12 = vand.u32 4294901760, %v266_v44  ;;  %v278_v7 = vsub.f32 %v2491_v13, %v3670_v49  ;;  %v3680_v38 = vand.u32 4294901760, %v2528_v54 }
  0x24   :  { %173 = vmatpush.msra.mxu0 %v2427_v35  ;;  %238 = vmatpush.msra.mxu1 %v237_v62  ;;  %v124_v62 = vld [vmem:[#allocation5 + $0x1e0] sm:$0xff]  ;;  %v2552_v26 = vsub.f32 %v130_v39, %v2525_v53  ;;  %v284_v44 = vsub.f32 %v2505_v36, %v3673_v61  ;;  %v3681_v49 = vand.u32 4294901760, %v2535_v60  ;;  %v3733_v15 = vand.u32 4294901760, %v2384_v16 }
  0x25   :  { %334 = vmatpush.msra.mxu2 %v2442_v45  ;;  %386 = vmatpush.msra.mxu3 %v2427_v35  ;;  %v2554_v1 = vand.u32 4294901760, %v124_v62  ;;  %v578_v39 = vsub.f32 %v2513_v42, %v3675_v2  ;;  %v279_v61 = vand.u32 4294901760, %v278_v7  ;;  %vm2161_vm2 = vcmask 353280  }
  0x26   :  { %175 = vmatpush.msra.mxu0 %v2444_v46  ;;  %244 = vmatpush.msra.mxu1 %v243_v6  ;;  %v2541_v6 = vand.u32 4294901760, %v127_v50  ;;  %v3683_v2 = vand.u32 4294901760, %v2552_v26  ;;  %v296_v7 = vsub.f32 %v2535_v60, %v3681_v49  ;;  %v112_v49 = vld [vmem:[#allocation5 + $0x180] sm:$0xff] }
  0x27   :  { %337 = vmatpush.msra.mxu2 %v2454_v51  ;;  %388 = vmatpush.msra.mxu3 %v2444_v46  ;;  %v2582_v40 = vsub.f32 %v124_v62, %v2554_v1  ;;  %v579_v62 = vand.u32 4294901760, %v578_v39  ;;  %v2607_v39 = vand.u32 4294901760, %v115_v27 }
  0x28   :  { %177 = vmatpush.msra.mxu0 %v2456_v52  ;;  %250 = vmatpush.msra.mxu1 %v249_v30  ;;  %v3677_v30 = vand.u32 4294901760, %v2520_v48  ;;  %v2567_v47 = vsub.f32 %v127_v50, %v2541_v6  ;;  %v584_v50 = vsub.f32 %v2528_v54, %v3680_v38 }
  0x29   :  { %340 = vmatpush.msra.mxu2 %v2465_v56  ;;  %390 = vmatpush.msra.mxu3 %v2456_v52 }
  0x2a   :  { %179 = vmatpush.msra.mxu0 %v2467_v57  ;;  %256 = vmatpush.msra.mxu1 %v255_v43  ;;  %v273_v43 = vand.u32 4294901760, %v272_v59  ;;  %v118_v59 = vld [vmem:[#allocation5 + $0x1b0] sm:$0xff]  ;;  %v290_v41 = vsub.f32 %v2520_v48, %v3677_v30  ;;  %v2588_v30 = vand.u32 4294901760, %v60_v58  ;;  %v585_v14 = vand.u32 4294901760, %v584_v50 }
  0x2b   :  { %343 = vmatpush.msra.mxu2 %v2477_v63  ;;  %392 = vmatpush.msra.mxu3 %v2467_v57  ;;  %v2590_v33 = vand.u32 4294901760, %v118_v59 }
  0x2c   :  { %181 = vmatpush.msra.mxu0 %v2479_v0  ;;  %262 = vmatpush.msra.mxu1 %v261_v55  ;;  %v2569_v55 = vand.u32 4294901760, %v121_v32 }
  0x2d   :  { %346 = vmatpush.msra.mxu2 %v2491_v13  ;;  %394 = vmatpush.msra.mxu3 %v2479_v0  ;;  %v2614_v38 = vsub.f32 %v118_v59, %v2590_v33  ;;  %v3735_v59 = vand.u32 4294901760, %v2389_v19  ;;  %v3738_v19 = vand.u32 4294901760, %v2392_v20  ;;  %v3739_v20 = vand.u32 4294901760, %v2402_v25 }
  0x2e   :  { %183 = vmatpush.msra.mxu0 %v2493_v18  ;;  %268 = vmatpush.msra.mxu1 %v267_v12  ;;  %v285_v12 = vand.u32 4294901760, %v284_v44  ;;  %v291_v44 = vand.u32 4294901760, %v290_v41  ;;  %v297_v41 = vand.u32 4294901760, %v296_v7  ;;  %v3736_v7 = vand.u32 4294901760, %v2582_v40 }
  0x2f   :  { %349 = vmatpush.msra.mxu2 %v2505_v36  ;;  %396 = vmatpush.msra.mxu3 %v2493_v18 }
  0x30   :  { %185 = vmatpush.msra.mxu0 %v2507_v37  ;;  %274 = vmatpush.msra.mxu1 %v273_v43  ;;  %v2597_v43 = vsub.f32 %v121_v32, %v2569_v55  ;;  %v2622_v32 = vand.u32 4294901760, %v112_v49 }
  0x31   :  { %352 = vmatpush.msra.mxu2 %v2520_v48  ;;  %398 = vmatpush.msra.mxu3 %v2507_v37 }
  0x32   :  { %415 = vmatpush.msrb.mxu0 %v205_v22  ;;  %280 = vmatpush.msra.mxu1 %v279_v61  ;;  %v590_v22 = vsub.f32 %v2552_v26, %v3683_v2  ;;  %v2611_v61 = vsub.f32 %v60_v58, %v2588_v30  ;;  %v607_v2 = vand.u32 4294901760, %v2597_v43  ;;  %v62_v58 = vld [vmem:[#allocation2 + $0x10] sm:$0x3] }
  0x33   :  { %355 = vmatpush.msra.mxu2 %v2535_v60  ;;  %580 = vmatpush.msrb.mxu3 %v579_v62  ;;  %v602_v62 = vsub.f32 %v2582_v40, %v3736_v7 }
  0x34   :  { %419 = vmatpush.msrb.mxu0 %v211_v23  ;;  %286 = vmatpush.msra.mxu1 %v285_v12  ;;  %v3734_v23 = vand.u32 4294901760, %v2567_v47  ;;  %v149_v12 = vsel %vm147_vm0, %v61_v24, 0  ;;  %v591_v16 = vand.u32 4294901760, %v590_v22  ;;  %v2636_v24 = vand.u32 4294901760, %v2611_v61 }
  0x35   :  { %534 = vmatpush.msrb.mxu2 %v2484_v8  ;;  %586 = vmatpush.msrb.mxu3 %v585_v14  ;;  %v2647_v22 = vand.u32 4294901760, %v62_v58 }
  0x36   :  { %423 = vmatpush.msrb.mxu0 %v3733_v15  ;;  %v596_v50 = vsub.f32 %v2567_v47, %v3734_v23  ;;  %292 = vmatpush.msra.mxu1 %v291_v44  ;;  %v2632_v15 = vsub.f32 %v115_v27, %v2607_v39  ;;  %v613_v44 = vand.u32 4294901760, %v2614_v38  ;;  %v2639_v23 = vand.u32 4294901760, %v149_v12 }
  0x37   :  { %536 = vmatpush.msrb.mxu2 %v2498_v31  ;;  %v608_v27 = vsub.f32 %v2597_v43, %v607_v2  ;;  %592 = vmatpush.msrb.mxu3 %v591_v16  ;;  %v2669_v16 = vsub.f32 %v62_v58, %v2647_v22  ;;  %v3742_v58 = vand.u32 4294901760, %v2425_v34 }
  0x38   :  { %427 = vmatpush.msrb.mxu0 %v3735_v59  ;;  %298 = vmatpush.msra.mxu1 %v297_v41  ;;  %3737 = vst [vmem:[#allocation12_spill] sm:$0xff] %v2639_v23  ;;  %v597_v14 = vand.u32 4294901760, %v596_v50  ;;  %v2650_v41 = vsub.f32 %v112_v49, %v2622_v32  ;;  %v189_v59 = vsub.f32 %v2611_v61, %v2636_v24  ;;  %v603_v50 = vand.u32 4294901760, %v602_v62 }
  0x39   :  { %538 = vmatpush.msrb.mxu2 %v2525_v53  ;;  %v619_v7 = vand.u32 4294901760, %v2632_v15  ;;  %402 = vmatmul.f32.vlgmr.msra.gmra.mxu3 %v2636_v24  ;;  %v2665_v49 = vsub.f32 %v149_v12, %v2639_v23  ;;  %v609_v25 = vand.u32 4294901760, %v608_v27 }
  0x3a   :  { %358 = vmatmul.f32.vlgmr.msra.gmra.mxu2 %v2611_v61  ;;  %431 = vmatpush.msrb.mxu0 %v3738_v19  ;;  %v63_v19 = vld [vmem:[#allocation2 + $0x18] sm:$0x3]  ;;  %v625_v62 = vand.u32 4294901760, %v2650_v41 }
  0x3b   :  { %486 = vmatpush.msrb.mxu1 %v2363_v3  ;;  %540 = vmatpush.msrb.mxu2 %v2541_v6  ;;  %v614_v3 = vsub.f32 %v2614_v38, %v613_v44  ;;  %3740 = vst [vmem:[#allocation13_spill] sm:$0xff] %v2665_v49  ;;  %v620_v12 = vsub.f32 %v2632_v15, %v619_v7  ;;  %v2686_v27 = vand.u32 4294901760, %v2665_v49 }
  0x3c   :  { %435 = vmatpush.msrb.mxu0 %v3739_v20  ;;  %598 = vmatpush.msrb.mxu3 %v597_v14  ;;  %v3741_v20 = vand.u32 4294901760, %v2407_v28  ;;  %v152_v14 = vsel %vm147_vm0, %v63_v19, 0 }
  0x3d   :  { %488 = vmatpush.msrb.mxu1 %v2365_v4  ;;  %542 = vmatpush.msrb.mxu2 %v2554_v1  ;;  %v2675_v4 = vand.u32 4294901760, %v189_v59  ;;  %v615_v28 = vand.u32 4294901760, %v614_v3  ;;  %3743 = vst [vmem:[#allocation14_spill] sm:$0xff] %v2686_v27  ;;  %v626_v59 = vsub.f32 %v2650_v41, %v625_v62  ;;  %v2697_v34 = vand.u32 4294901760, %v152_v14 }
  0x3e   :  { %439 = vmatpush.msrb.mxu0 %v3741_v20  ;;  %604 = vmatpush.msrb.mxu3 %v603_v50  ;;  %v621_v50 = vand.u32 4294901760, %v620_v12  ;;  %v554_v19 = vsub.f32 %v2665_v49, %v2686_v27  ;;  %v3748_v12 = vand.u32 4294901760, %v2465_v56  ;;  %v107_v56 = vld [vmem:[#allocation5 + $0x158] sm:$0xff] }
  0x3f   :  { %490 = vmatpush.msrb.mxu1 %v2367_v5  ;;  %544 = vmatpush.msrb.mxu2 %v2569_v55  ;;  %v2690_v5 = vand.u32 4294901760, %v2669_v16  ;;  %3744 = vst [vmem:[#allocation15_spill] sm:$0xff] %v2697_v34  ;;  %v627_v20 = vand.u32 4294901760, %v626_v59  ;;  %v104_v59 = vld [vmem:[#allocation5 + $0x140] sm:$0xff] }
  0x40   :  { %443 = vmatpush.msrb.mxu0 %v3742_v58  ;;  %610 = vmatpush.msrb.mxu3 %v609_v25  ;;  %v3746_v25 = vand.u32 4294901760, %v2454_v51  ;;  %v2721_v51 = vand.u32 4294901760, %v554_v19  ;;  %v2760_v19 = vand.u32 4294901760, %v104_v59 }
  0x41   :  { %492 = vmatpush.msrb.mxu1 %v2369_v9  ;;  %546 = vmatpush.msrb.mxu2 %v2590_v33  ;;  %v3745_v9 = vand.u32 4294901760, %v2442_v45  ;;  %v197_v3 = vsub.f32 %v2669_v16, %v2690_v5 }
  0x42   :  { %191 = vmatmul.f32.vlgmr.msra.gmra.mxu0 %v2675_v4  ;;  %363 = vmatmul.f32.gmra.mxu2 %v2669_v16  ;;  %3749 = vst [vmem:[#allocation17_spill] sm:$0xff] %v2721_v51 }
  0x43   :  { %447 = vmatpush.msrb.mxu0 %v3745_v9  ;;  %494 = vmatpush.msrb.mxu1 %v2371_v10  ;;  %v2713_v10 = vsub.f32 %v152_v14, %v2697_v34  ;;  %v2716_v45 = vand.u32 4294901760, %v197_v3  ;;  %v3750_v14 = vand.u32 4294901760, %v2477_v63  ;;  %v3752_v63 = vand.u32 4294901760, %v2491_v13 }
  0x44   :  { %548 = vmatpush.msrb.mxu2 %v2607_v39  ;;  %616 = vmatpush.msrb.mxu3 %v615_v28  ;;  %v2745_v28 = vand.u32 4294901760, %v107_v56  ;;  %v3753_v9 = vand.u32 4294901760, %v2505_v36 }
  0x45   :  { %408 = vmatmul.f32.gmra.mxu3 %v2690_v5  ;;  %451 = vmatpush.msrb.mxu0 %v3746_v25  ;;  %3747 = vst [vmem:[#allocation16_spill] sm:$0xff] %v2713_v10  ;;  %v2728_v58 = vand.u32 4294901760, %v2713_v10  ;;  %v3756_v25 = vand.u32 4294901760, %v2535_v60 }
  0x46   :  { %496 = vmatpush.msrb.mxu1 %v2373_v11  ;;  %550 = vmatpush.msrb.mxu2 %v2622_v32  ;;  %v110_v11 = vld [vmem:[#allocation5 + $0x170] sm:$0xff]  ;;  %v2765_v36 = vsub.f32 %v107_v56, %v2745_v28 }
  0x47   :  { %622 = vmatpush.msrb.mxu3 %v621_v50  ;;  %455 = vmatpush.msrb.mxu0 %v3748_v12  ;;  %3751 = vst [vmem:[#allocation18_spill] sm:$0xff] %v2728_v58  ;;  %v3754_v50 = vand.u32 4294901760, %v2520_v48 }
  0x48   :  { %647 = vmatpush.msra.mxu2 %v2513_v42  ;;  %498 = vmatpush.msrb.mxu1 %v2386_v17  ;;  %v2734_v17 = vand.u32 4294901760, %v110_v11  ;;  %v3686_v60 = vand.u32 4294901760, %v2765_v36 }
  0x49   :  { %628 = vmatpush.msrb.mxu3 %v627_v20  ;;  %459 = vmatpush.msrb.mxu0 %v3750_v14 }
  0x4a   :  { %650 = vmatpush.msra.mxu2 %v2528_v54  ;;  %500 = vmatpush.msrb.mxu1 %v2394_v21  ;;  %v562_v21 = vsub.f32 %v2713_v10, %v2728_v58  ;;  %v2751_v13 = vsub.f32 %v110_v11, %v2734_v17  ;;  %v95_v11 = vld [vmem:[#allocation5 + $0xf8] sm:$0xff] }
  0x4b   :  { %691 = vmatpush.msra.mxu3 %v2484_v8  ;;  %199 = vmatmul.f32.gmra.mxu0 %v2716_v45 }
  0x4c   :  { %300 = vmatmul.f32.vlgmr.msra.gmra.mxu1 %v2588_v30  ;;  %556 = vmatmul.f32.vlgmr.msrb.gmra.mxu2 %v2721_v51  ;;  %v2758_v3 = vand.u32 4294901760, %v562_v21  ;;  %v3687_v48 = vand.u32 4294901760, %v2751_v13  ;;  %v92_v21 = vld [vmem:[#allocation5 + $0xe0] sm:$0xff] }
  0x4d   :  { %653 = vmatpush.msra.mxu2 %v2552_v26  ;;  %693 = vmatpush.msra.mxu3 %v2498_v31 }
  0x4e   :  { %463 = vmatpush.msrb.mxu0 %v3752_v63  ;;  %502 = vmatpush.msrb.mxu1 %v2409_v29  ;;  %v101_v29 = vld [vmem:[#allocation5 + $0x128] sm:$0xff]  ;;  %3755 = vst [vmem:[#allocation19_spill] sm:$0xff] %v2758_v3  ;;  %v859_v14 = vsub.f32 %v2751_v13, %v3687_v48  ;;  %v2796_v63 = vand.u32 4294901760, %v95_v11  ;;  %v80_v48 = vld [vmem:[#allocation5 + $0x80] sm:$0xff] }
  0x4f   :  { %630 = vmatmul.f32.vlgmr.msrb.gmra.mxu3 %v2639_v23  ;;  %656 = vmatpush.msra.mxu2 %v2567_v47  ;;  %v2771_v20 = vand.u32 4294901760, %v101_v29 }
  0x50   :  { %695 = vmatpush.msra.mxu3 %v2525_v53  ;;  %467 = vmatpush.msrb.mxu0 %v3753_v9  ;;  %v865_v9 = vsub.f32 %v2765_v36, %v3686_v60 }
  0x51   :  { %504 = vmatpush.msrb.mxu1 %v2427_v35  ;;  %659 = vmatpush.msra.mxu2 %v2582_v40  ;;  %v98_v35 = vld [vmem:[#allocation5 + $0x110] sm:$0xff]  ;;  %v2792_v56 = vsub.f32 %v101_v29, %v2771_v20  ;;  %v89_v29 = vld [vmem:[#allocation5 + $0xc8] sm:$0xff] }
  0x52   :  { %697 = vmatpush.msra.mxu3 %v2541_v6  ;;  %471 = vmatpush.msrb.mxu0 %v3754_v50  ;;  %v2780_v12 = vand.u32 4294901760, %v98_v35  ;;  %v3759_v50 = vand.u32 4294901760, %v2552_v26 }
  0x53   :  { %506 = vmatpush.msrb.mxu1 %v2444_v46  ;;  %662 = vmatpush.msra.mxu2 %v2597_v43  ;;  %v2778_v46 = vsub.f32 %v104_v59, %v2760_v19 }
  0x54   :  { %699 = vmatpush.msra.mxu3 %v2554_v1  ;;  %475 = vmatpush.msrb.mxu0 %v3756_v25  ;;  %v2803_v59 = vsub.f32 %v98_v35, %v2780_v12  ;;  %v3685_v25 = vand.u32 4294901760, %v2792_v56  ;;  %v86_v35 = vld [vmem:[#allocation5 + $0xb0] sm:$0xff] }
  0x55   :  { %508 = vmatpush.msrb.mxu1 %v2456_v52  ;;  %477 = vmatmul.f32.vlgmr.msrb.gmra.mxu0 %v2588_v30  ;;  %v3757_v52 = vand.u32 4294901760, %v2513_v42  ;;  %v3758_v42 = vand.u32 4294901760, %v2528_v54  ;;  %v860_v54 = vand.u32 4294901760, %v859_v14 }
  0x56   :  { %304 = vmatmul.f32.gmra.mxu1 %v2647_v22  ;;  %564 = vmatmul.f32.gmra.mxu2 %v2758_v3  ;;  %v882_v14 = vand.u32 4294901760, %v2803_v59 }
  0x57   :  { %665 = vmatpush.msra.mxu2 %v2614_v38  ;;  %701 = vmatpush.msra.mxu3 %v2569_v55 }
  0x58   :  { %731 = vmatpush.msra.mxu0 %v3757_v52  ;;  %510 = vmatpush.msrb.mxu1 %v2467_v57  ;;  %v3684_v57 = vand.u32 4294901760, %v2778_v46  ;;  %v2814_v52 = vand.u32 4294901760, %v92_v21 }
  0x59   :  { %634 = vmatmul.f32.gmra.mxu3 %v2697_v34  ;;  %668 = vmatpush.msra.mxu2 %v2632_v15 }
  0x5a   :  { %703 = vmatpush.msra.mxu3 %v2590_v33  ;;  %735 = vmatpush.msra.mxu0 %v3758_v42  ;;  %v3760_v42 = vand.u32 4294901760, %v2567_v47  ;;  %v871_v26 = vsub.f32 %v2778_v46, %v3684_v57  ;;  %v877_v47 = vsub.f32 %v2792_v56, %v3685_v25  ;;  %v2839_v57 = vand.u32 4294901760, %v86_v35 }
  0x5b   :  { %512 = vmatpush.msrb.mxu1 %v2479_v0  ;;  %671 = vmatpush.msra.mxu2 %v2650_v41  ;;  %v2819_v0 = vsub.f32 %v95_v11, %v2796_v63  ;;  %v83_v11 = vld [vmem:[#allocation5 + $0x98] sm:$0xff]  ;;  %v883_v25 = vsub.f32 %v2803_v59, %v882_v14 }
  0x5c   :  { %705 = vmatpush.msra.mxu3 %v2607_v39  ;;  %739 = vmatpush.msra.mxu0 %v3759_v50  ;;  %v2828_v50 = vand.u32 4294901760, %v89_v29  ;;  %v2853_v60 = vand.u32 4294901760, %v83_v11 }
  0x5d   :  { %514 = vmatpush.msrb.mxu1 %v2493_v18  ;;  %808 = vmatpush.msrb.mxu2 %v2734_v17  ;;  %v866_v18 = vand.u32 4294901760, %v865_v9  ;;  %v3761_v9 = vand.u32 4294901760, %v2582_v40  ;;  %v878_v40 = vand.u32 4294901760, %v877_v47  ;;  %v74_v47 = vld [vmem:[#allocation5 + $0x50] sm:$0xff] }
  0x5e   :  { %707 = vmatpush.msra.mxu3 %v2622_v32  ;;  %743 = vmatpush.msra.mxu0 %v3760_v42  ;;  %v2837_v42 = vsub.f32 %v92_v21, %v2814_v52  ;;  %v2851_v21 = vsub.f32 %v89_v29, %v2828_v50 }
  0x5f   :  { %516 = vmatpush.msrb.mxu1 %v2507_v37  ;;  %810 = vmatpush.msrb.mxu2 %v2745_v28  ;;  %v888_v37 = vand.u32 4294901760, %v2819_v0 }
  0x60   :  { %861 = vmatpush.msrb.mxu3 %v860_v54  ;;  %481 = vmatmul.f32.gmra.mxu0 %v2647_v22  ;;  %v872_v54 = vand.u32 4294901760, %v871_v26  ;;  %v2861_v26 = vsub.f32 %v86_v35, %v2839_v57  ;;  %v3688_v43 = vand.u32 4294901760, %v2851_v21  ;;  %v2874_v35 = vsub.f32 %v83_v11, %v2853_v60 }
  0x61   :  { %518 = vmatmul.f32.vlgmr.msrb.gmra.mxu1 %v2588_v30  ;;  %674 = vmatmul.f32.vlgmr.msra.gmra.mxu2 %v2665_v49  ;;  %v889_v29 = vsub.f32 %v2819_v0, %v888_v37 }
  0x62   :  { %747 = vmatpush.msra.mxu0 %v3761_v9  ;;  %781 = vmatpush.msra.mxu1 %v2484_v8  ;;  %v3690_v8 = vand.u32 4294901760, %v2837_v42  ;;  %v77_v9 = vld [vmem:[#allocation5 + $0x68] sm:$0xff]  ;;  %v901_v15 = vsub.f32 %v2851_v21, %v3688_v43 }
  0x63   :  { %812 = vmatpush.msrb.mxu2 %v2760_v19  ;;  %867 = vmatpush.msrb.mxu3 %v866_v18  ;;  %v2868_v18 = vand.u32 4294901760, %v80_v48  ;;  %v65_v43 = vld [vmem:[#allocation5 + $0x8] sm:$0xff] }
  0x64   :  { %711 = vmatmul.f32.vlgmr.msra.gmra.mxu3 %v2686_v27  ;;  %751 = vmatpush.msra.mxu0 %v607_v2  ;;  %v884_v2 = vand.u32 4294901760, %v883_v25  ;;  %v895_v38 = vsub.f32 %v2837_v42, %v3690_v8  ;;  %v71_v25 = vld [vmem:[#allocation5 + $0x38] sm:$0xff] }
  0x65   :  { %783 = vmatpush.msra.mxu1 %v2498_v31  ;;  %814 = vmatpush.msrb.mxu2 %v2771_v20  ;;  %v2878_v31 = vand.u32 4294901760, %v77_v9  ;;  %v2889_v11 = vsub.f32 %v80_v48, %v2868_v18  ;;  %v2904_v48 = vand.u32 4294901760, %v71_v25 }
  0x66   :  { %873 = vmatpush.msrb.mxu3 %v872_v54  ;;  %755 = vmatpush.msra.mxu0 %v613_v44  ;;  %v3689_v44 = vand.u32 4294901760, %v2861_v26  ;;  %v2891_v54 = vand.u32 4294901760, %v74_v47 }
  0x67   :  { %785 = vmatpush.msra.mxu1 %v2525_v53  ;;  %816 = vmatpush.msrb.mxu2 %v2780_v12  ;;  %v890_v53 = vand.u32 4294901760, %v889_v29  ;;  %v896_v29 = vand.u32 4294901760, %v895_v38  ;;  %v918_v41 = vand.u32 4294901760, %v2889_v11 }
  0x68   :  { %879 = vmatpush.msrb.mxu3 %v878_v40  ;;  %759 = vmatpush.msra.mxu0 %v619_v7  ;;  %v3691_v7 = vand.u32 4294901760, %v2874_v35  ;;  %v68_v40 = vld [vmem:[#allocation5 + $0x20] sm:$0xff] }
  0x69   :  { %787 = vmatpush.msra.mxu1 %v2541_v6  ;;  %818 = vmatpush.msrb.mxu2 %v2796_v63  ;;  %v2902_v6 = vsub.f32 %v77_v9, %v2878_v31  ;;  %v2916_v9 = vand.u32 4294901760, %v68_v40 }
  0x6a   :  { %885 = vmatpush.msrb.mxu3 %v884_v2  ;;  %522 = vmatmul.f32.gmra.mxu1 %v2647_v22  ;;  %v907_v2 = vsub.f32 %v2861_v26, %v3689_v44  ;;  %v913_v38 = vsub.f32 %v2874_v35, %v3691_v7  ;;  %v2929_v44 = vand.u32 4294901760, %v65_v43 }
  0x6b   :  { %679 = vmatmul.f32.gmra.mxu2 %v2713_v10  ;;  %763 = vmatpush.msra.mxu0 %v625_v62  ;;  %v2914_v62 = vsub.f32 %v74_v47, %v2891_v54  ;;  %v2927_v47 = vsub.f32 %v71_v25, %v2904_v48  ;;  %v2939_v7 = vsub.f32 %v68_v40, %v2916_v9 }
  0x6c   :  { %789 = vmatpush.msra.mxu1 %v2554_v1  ;;  %820 = vmatpush.msrb.mxu2 %v2814_v52  ;;  %v902_v1 = vand.u32 4294901760, %v901_v15  ;;  %v908_v8 = vand.u32 4294901760, %v907_v2  ;;  %v914_v25 = vand.u32 4294901760, %v913_v38  ;;  %v2949_v2 = vsub.f32 %v65_v43, %v2929_v44 }
  0x6d   :  { %891 = vmatpush.msrb.mxu3 %v890_v53  ;;  %963 = vmatpush.msrb.mxu0 %v2751_v13  ;;  %v924_v53 = vand.u32 4294901760, %v2902_v6  ;;  %v930_v15 = vand.u32 4294901760, %v2914_v62 }
  0x6e   :  { %717 = vmatmul.f32.gmra.mxu3 %v2728_v58  ;;  %765 = vmatmul.f32.vlgmr.msra.gmra.mxu0 %v2639_v23  ;;  %v948_v43 = vand.u32 4294901760, %v2949_v2 }
  0x6f   :  { %791 = vmatpush.msra.mxu1 %v2569_v55  ;;  %822 = vmatpush.msrb.mxu2 %v2828_v50  ;;  %v919_v55 = vsub.f32 %v2889_v11, %v918_v41 }
  0x70   :  { %897 = vmatpush.msrb.mxu3 %v896_v29  ;;  %966 = vmatpush.msrb.mxu0 %v2765_v36  ;;  %v936_v29 = vand.u32 4294901760, %v2927_v47 }
  0x71   :  { %793 = vmatpush.msra.mxu1 %v2590_v33  ;;  %824 = vmatpush.msrb.mxu2 %v2839_v57  ;;  %v925_v33 = vsub.f32 %v2902_v6, %v924_v53  ;;  %v920_v40 = vand.u32 4294901760, %v919_v55 }
  0x72   :  { %903 = vmatpush.msrb.mxu3 %v902_v1  ;;  %969 = vmatpush.msrb.mxu0 %v2778_v46  ;;  %v942_v1 = vand.u32 4294901760, %v2939_v7 }
  0x73   :  { %795 = vmatpush.msra.mxu1 %v2607_v39  ;;  %826 = vmatpush.msrb.mxu2 %v2853_v60  ;;  %v931_v39 = vsub.f32 %v2914_v62, %v930_v15 }
  0x74   :  { %909 = vmatpush.msrb.mxu3 %v908_v8  ;;  %972 = vmatpush.msrb.mxu0 %v2792_v56  ;;  %v926_v8 = vand.u32 4294901760, %v925_v33  ;;  %v943_v55 = vsub.f32 %v2939_v7, %v942_v1  ;;  %v949_v33 = vsub.f32 %v2949_v2, %v948_v43 }
  0x75   :  { %797 = vmatpush.msra.mxu1 %v2622_v32  ;;  %828 = vmatpush.msrb.mxu2 %v2868_v18  ;;  %v937_v32 = vsub.f32 %v2927_v47, %v936_v29  ;;  %v932_v38 = vand.u32 4294901760, %v931_v39 }
  0x76   :  { %799 = vmatmul.f32.vlgmr.msra.gmra.mxu1 %v2639_v23  ;;  %915 = vmatpush.msrb.mxu3 %v914_v25  ;;  %v950_v39 = vand.u32 4294901760, %v949_v33  ;;  %v131_v33 = vld [vmem:[#allocation5 + $0x218] sm:$0xff] }
  0x77   :  { %975 = vmatpush.msrb.mxu0 %v2803_v59  ;;  %1021 = vmatpush.msrb.mxu1 %v2734_v17  ;;  %v938_v25 = vand.u32 4294901760, %v937_v32  ;;  %v137_v32 = vld [vmem:[#allocation5 + $0x248] sm:$0xff] }
  0x78   :  { %769 = vmatmul.f32.gmra.mxu0 %v2697_v34  ;;  %830 = vmatpush.msrb.mxu2 %v2878_v31 }
  0x79   :  { %921 = vmatpush.msrb.mxu3 %v920_v40  ;;  %978 = vmatpush.msrb.mxu0 %v2819_v0  ;;  %v944_v40 = vand.u32 4294901760, %v943_v55  ;;  %v134_v55 = vld [vmem:[#allocation5 + $0x230] sm:$0xff] }
  0x7a   :  { %1023 = vmatpush.msrb.mxu1 %v2745_v28  ;;  %832 = vmatpush.msrb.mxu2 %v2891_v54  ;;  %v122_v0 = vld [vmem:[#allocation5 + $0x1d0] sm:$0xff] }
  0x7b   :  { %927 = vmatpush.msrb.mxu3 %v926_v8  ;;  %981 = vmatpush.msrb.mxu0 %v2837_v42  ;;  %v3762_v8 = vand.u32 4294901760, %v2751_v13  ;;  %v3764_v13 = vand.u32 4294901760, %v2778_v46 }
  0x7c   :  { %1025 = vmatpush.msrb.mxu1 %v2760_v19  ;;  %834 = vmatpush.msrb.mxu2 %v2904_v48 }
  0x7d   :  { %933 = vmatpush.msrb.mxu3 %v932_v38  ;;  %984 = vmatpush.msrb.mxu0 %v2851_v21  ;;  %v3763_v38 = vand.u32 4294901760, %v2765_v36  ;;  %v3004_v36 = vand.u32 4294901760, %v134_v55 }
  0x7e   :  { %1027 = vmatpush.msrb.mxu1 %v2771_v20  ;;  %836 = vmatpush.msrb.mxu2 %v2916_v9 }
  0x7f   :  { %803 = vmatmul.f32.gmra.mxu1 %v2697_v34  ;;  %939 = vmatpush.msrb.mxu3 %v938_v25  ;;  %v2997_v25 = vand.u32 4294901760, %v137_v32 }
  0x80   :  { %987 = vmatpush.msrb.mxu0 %v2861_v26  ;;  %1029 = vmatpush.msrb.mxu1 %v2780_v12 }
  0x81   :  { %838 = vmatpush.msrb.mxu2 %v2929_v44  ;;  %945 = vmatpush.msrb.mxu3 %v944_v40  ;;  %v3012_v46 = vsub.f32 %v137_v32, %v2997_v25  ;;  %v128_v40 = vld [vmem:[#allocation5 + $0x200] sm:$0xff]  ;;  %v119_v32 = vld [vmem:[#allocation5 + $0x1b8] sm:$0xff] }
  0x82   :  { %990 = vmatpush.msrb.mxu0 %v2874_v35  ;;  %1031 = vmatpush.msrb.mxu1 %v2796_v63 }
  0x83   :  { %1068 = vmatpush.msra.mxu2 %v3762_v8  ;;  %951 = vmatpush.msrb.mxu3 %v950_v39  ;;  %v125_v39 = vld [vmem:[#allocation5 + $0x1e8] sm:$0xff]  ;;  %v3767_v8 = vand.u32 4294901760, %v2851_v21  ;;  %v3768_v21 = vand.u32 4294901760, %v2861_v26  ;;  %v3769_v26 = vand.u32 4294901760, %v2874_v35 }
  0x84   :  { %993 = vmatpush.msrb.mxu0 %v2889_v11  ;;  %1033 = vmatpush.msrb.mxu1 %v2814_v52 }
  0x85   :  { %1072 = vmatpush.msra.mxu2 %v3763_v38  ;;  %1139 = vmatpush.msra.mxu3 %v2734_v17  ;;  %v3765_v17 = vand.u32 4294901760, %v2792_v56  ;;  %v3027_v56 = vand.u32 4294901760, %v128_v40  ;;  %v3054_v38 = vand.u32 4294901760, %v122_v0 }
  0x86   :  { %996 = vmatpush.msrb.mxu0 %v2902_v6  ;;  %1035 = vmatpush.msrb.mxu1 %v2828_v50 }
  0x87   :  { %1076 = vmatpush.msra.mxu2 %v3764_v13  ;;  %1141 = vmatpush.msra.mxu3 %v2745_v28  ;;  %v3014_v28 = vand.u32 4294901760, %v131_v33  ;;  %v3065_v13 = vand.u32 4294901760, %v119_v32 }
  0x88   :  { %999 = vmatpush.msrb.mxu0 %v2914_v62  ;;  %1037 = vmatpush.msrb.mxu1 %v2839_v57 }
  0x89   :  { %1080 = vmatpush.msra.mxu2 %v3765_v17  ;;  %1143 = vmatpush.msra.mxu3 %v2760_v19  ;;  %v3022_v19 = vsub.f32 %v134_v55, %v3004_v36  ;;  %v3033_v59 = vsub.f32 %v131_v33, %v3014_v28  ;;  %v116_v33 = vld [vmem:[#allocation5 + $0x1a0] sm:$0xff] }
  0x8a   :  { %1002 = vmatpush.msrb.mxu0 %v2927_v47  ;;  %1039 = vmatpush.msrb.mxu1 %v2853_v60 }
  0x8b   :  { %1084 = vmatpush.msra.mxu2 %v882_v14  ;;  %1145 = vmatpush.msra.mxu3 %v2771_v20  ;;  %v1230_v20 = vand.u32 4294901760, %v3012_v46  ;;  %v3766_v14 = vand.u32 4294901760, %v2837_v42  ;;  %v3047_v42 = vsub.f32 %v128_v40, %v3027_v56  ;;  %v1242_v55 = vand.u32 4294901760, %v3033_v59 }
  0x8c   :  { %1005 = vmatpush.msrb.mxu0 %v2939_v7  ;;  %1041 = vmatpush.msrb.mxu1 %v2868_v18 }
  0x8d   :  { %1088 = vmatpush.msra.mxu2 %v888_v37  ;;  %1147 = vmatpush.msra.mxu3 %v2780_v12  ;;  %v3040_v12 = vand.u32 4294901760, %v125_v39  ;;  %v1236_v37 = vand.u32 4294901760, %v3022_v19 }
  0x8e   :  { %1008 = vmatpush.msrb.mxu0 %v2949_v2  ;;  %1043 = vmatpush.msrb.mxu1 %v2878_v31 }
  0x8f   :  { %1092 = vmatpush.msra.mxu2 %v3766_v14  ;;  %1149 = vmatpush.msra.mxu3 %v2796_v63  ;;  %v1231_v63 = vsub.f32 %v3012_v46, %v1230_v20  ;;  %v3068_v17 = vsub.f32 %v125_v39, %v3040_v12  ;;  %v1243_v14 = vsub.f32 %v3033_v59, %v1242_v55 }
  0x90   :  { %1187 = vmatpush.msra.mxu0 %v2997_v25  ;;  %1045 = vmatpush.msrb.mxu1 %v2891_v54  ;;  %v3080_v39 = vsub.f32 %v122_v0, %v3054_v38 }
  0x91   :  { %1096 = vmatpush.msra.mxu2 %v3767_v8  ;;  %1151 = vmatpush.msra.mxu3 %v2814_v52  ;;  %v1237_v52 = vsub.f32 %v3022_v19, %v1236_v37  ;;  %v1232_v40 = vand.u32 4294901760, %v1231_v63  ;;  %v113_v8 = vld [vmem:[#allocation5 + $0x188] sm:$0xff]  ;;  %v1254_v35 = vand.u32 4294901760, %v3068_v17  ;;  %v3091_v63 = vsub.f32 %v119_v32, %v3065_v13 }
  0x92   :  { %1189 = vmatpush.msra.mxu0 %v3004_v36  ;;  %1047 = vmatpush.msrb.mxu1 %v2904_v48  ;;  %v1244_v11 = vand.u32 4294901760, %v1243_v14 }
  0x93   :  { %1100 = vmatpush.msra.mxu2 %v3768_v21  ;;  %1153 = vmatpush.msra.mxu3 %v2828_v50  ;;  %v1248_v50 = vand.u32 4294901760, %v3047_v42  ;;  %v3084_v21 = vand.u32 4294901760, %v116_v33  ;;  %v1255_v32 = vsub.f32 %v3068_v17, %v1254_v35  ;;  %v1266_v6 = vand.u32 4294901760, %v3091_v63 }
  0x94   :  { %1191 = vmatpush.msra.mxu0 %v3014_v28  ;;  %1049 = vmatpush.msrb.mxu1 %v2916_v9 }
  0x95   :  { %1011 = vmatmul.f32.vlgmr.msrb.gmra.mxu0 %v2611_v61  ;;  %844 = vmatmul.f32.vlgmr.msrb.gmra.mxu2 %v2675_v4  ;;  %v1249_v0 = vsub.f32 %v3047_v42, %v1248_v50 }
  0x96   :  { %1104 = vmatpush.msra.mxu2 %v3769_v26  ;;  %1155 = vmatpush.msra.mxu3 %v2839_v57  ;;  %v1238_v57 = vand.u32 4294901760, %v1237_v52  ;;  %v3098_v26 = vand.u32 4294901760, %v113_v8 }
  0x97   :  { %1193 = vmatpush.msra.mxu0 %v3027_v56  ;;  %1051 = vmatpush.msrb.mxu1 %v2929_v44 }
  0x98   :  { %953 = vmatmul.f32.vlgmr.msrb.gmra.mxu3 %v2588_v30  ;;  %1108 = vmatpush.msra.mxu2 %v918_v41  ;;  %v1260_v41 = vand.u32 4294901760, %v3080_v39 }
  0x99   :  { %1157 = vmatpush.msra.mxu3 %v2853_v60  ;;  %1195 = vmatpush.msra.mxu0 %v3040_v12  ;;  %v3106_v60 = vsub.f32 %v116_v33, %v3084_v21 }
  0x9a   :  { %1233 = vmatpush.msra.mxu1 %v1232_v40  ;;  %1112 = vmatpush.msra.mxu2 %v924_v53  ;;  %v1250_v53 = vand.u32 4294901760, %v1249_v0  ;;  %v1261_v52 = vsub.f32 %v3080_v39, %v1260_v41 }
  0x9b   :  { %1055 = vmatmul.f32.vlgmr.msrb.gmra.mxu1 %v2636_v24  ;;  %1159 = vmatpush.msra.mxu3 %v2868_v18  ;;  %v3117_v18 = vsub.f32 %v113_v8, %v3098_v26  ;;  %v1272_v62 = vand.u32 4294901760, %v3106_v60 }
  0x9c   :  { %1197 = vmatpush.msra.mxu0 %v3054_v38  ;;  %1239 = vmatpush.msra.mxu1 %v1238_v57  ;;  %v1262_v40 = vand.u32 4294901760, %v1261_v52 }
  0x9d   :  { %1116 = vmatpush.msra.mxu2 %v930_v15  ;;  %1161 = vmatpush.msra.mxu3 %v2878_v31  ;;  %v1256_v31 = vand.u32 4294901760, %v1255_v32  ;;  %v1267_v15 = vsub.f32 %v3091_v63, %v1266_v6  ;;  %v1278_v33 = vand.u32 4294901760, %v3117_v18 }
  0x9e   :  { %1199 = vmatpush.msra.mxu0 %v3065_v13  ;;  %1245 = vmatpush.msra.mxu1 %v1244_v11 }
  0x9f   :  { %1016 = vmatmul.f32.gmra.mxu0 %v2669_v16  ;;  %852 = vmatmul.f32.gmra.mxu2 %v2716_v45  ;;  %v1268_v47 = vand.u32 4294901760, %v1267_v15  ;;  %v1279_v7 = vsub.f32 %v3117_v18, %v1278_v33  ;;  %v81_v15 = vld [vmem:[#allocation5 + $0x88] sm:$0xff] }
  0xa0   :  { %1120 = vmatpush.msra.mxu2 %v936_v29  ;;  %1163 = vmatpush.msra.mxu3 %v2891_v54  ;;  %v1273_v54 = vsub.f32 %v3106_v60, %v1272_v62 }
  0xa1   :  { %1201 = vmatpush.msra.mxu0 %v3084_v21  ;;  %1251 = vmatpush.msra.mxu1 %v1250_v53  ;;  %v1280_v29 = vand.u32 4294901760, %v1279_v7 }
  0xa2   :  { %957 = vmatmul.f32.gmra.mxu3 %v2647_v22  ;;  %1124 = vmatpush.msra.mxu2 %v942_v1  ;;  %v105_v1 = vld [vmem:[#allocation5 + $0x148] sm:$0xff] }
  0xa3   :  { %1165 = vmatpush.msra.mxu3 %v2904_v48  ;;  %1203 = vmatpush.msra.mxu0 %v3098_v26  ;;  %v1274_v48 = vand.u32 4294901760, %v1273_v54 }
  0xa4   :  { %1257 = vmatpush.msra.mxu1 %v1256_v31  ;;  %1128 = vmatpush.msra.mxu2 %v948_v43 }
  0xa5   :  { %1300 = vmatpush.msrb.mxu0 %v3012_v46  ;;  %1061 = vmatmul.f32.gmra.mxu1 %v2690_v5  ;;  %v3192_v46 = vand.u32 4294901760, %v105_v1 }
  0xa6   :  { %1167 = vmatpush.msra.mxu3 %v2916_v9  ;;  %1263 = vmatpush.msra.mxu1 %v1262_v40  ;;  %v108_v9 = vld [vmem:[#allocation5 + $0x160] sm:$0xff] }
  0xa7   :  { %1303 = vmatpush.msrb.mxu0 %v3022_v19  ;;  %1384 = vmatpush.msrb.mxu2 %v1230_v20  ;;  %v3183_v43 = vand.u32 4294901760, %v108_v9 }
  0xa8   :  { %1169 = vmatpush.msra.mxu3 %v2929_v44  ;;  %1269 = vmatpush.msra.mxu1 %v1268_v47  ;;  %v111_v44 = vld [vmem:[#allocation5 + $0x178] sm:$0xff] }
  0xa9   :  { %1209 = vmatmul.f32.vlgmr.msra.gmra.mxu0 %v2721_v51  ;;  %1388 = vmatpush.msrb.mxu2 %v1236_v37  ;;  %v3176_v2 = vand.u32 4294901760, %v111_v44  ;;  %v3200_v19 = vsub.f32 %v108_v9, %v3183_v43  ;;  %v132_v51 = vld [vmem:[#allocation5 + $0x220] sm:$0xff] }
  0xaa   :  { %1306 = vmatpush.msrb.mxu0 %v3033_v59  ;;  %1434 = vmatpush.msrb.mxu3 %v2997_v25 }
  0xab   :  { %1130 = vmatmul.f32.vlgmr.msra.gmra.mxu2 %v2588_v30  ;;  %1275 = vmatpush.msra.mxu1 %v1274_v48 }
  0xac   :  { %1309 = vmatpush.msrb.mxu0 %v3047_v42  ;;  %1392 = vmatpush.msrb.mxu2 %v1242_v55  ;;  %v96_v42 = vld [vmem:[#allocation5 + $0x100] sm:$0xff]  ;;  %v3697_v55 = vand.u32 4294901760, %v3200_v19 }
  0xad   :  { %1436 = vmatpush.msrb.mxu3 %v3004_v36  ;;  %1281 = vmatpush.msra.mxu1 %v1280_v29  ;;  %v78_v29 = vld [vmem:[#allocation5 + $0x70] sm:$0xff] }
  0xae   :  { %1171 = vmatmul.f32.vlgmr.msra.gmra.mxu3 %v2588_v30  ;;  %1312 = vmatpush.msrb.mxu0 %v3068_v17  ;;  %v93_v17 = vld [vmem:[#allocation5 + $0xe8] sm:$0xff] }
  0xaf   :  { %1344 = vmatpush.msrb.mxu1 %v2997_v25  ;;  %1396 = vmatpush.msrb.mxu2 %v1248_v50  ;;  %v102_v25 = vld [vmem:[#allocation5 + $0x130] sm:$0xff]  ;;  %v3226_v50 = vand.u32 4294901760, %v96_v42 }
  0xb0   :  { %1438 = vmatpush.msrb.mxu3 %v3014_v28  ;;  %1283 = vmatmul.f32.vlgmr.msra.gmra.mxu1 %v2639_v23  ;;  %v3202_v20 = vand.u32 4294901760, %v102_v25 }
  0xb1   :  { %1315 = vmatpush.msrb.mxu0 %v3080_v39  ;;  %1346 = vmatpush.msrb.mxu1 %v3004_v36  ;;  %v3190_v36 = vsub.f32 %v111_v44, %v3176_v2  ;;  %3770 = vst [vmem:[#allocation20_spill] sm:$0xff] %v3226_v50  ;;  %v90_v39 = vld [vmem:[#allocation5 + $0xd0] sm:$0xff]  ;;  %v3252_v11 = vsub.f32 %v96_v42, %v3226_v50  ;;  %v3293_v44 = vand.u32 4294901760, %v81_v15 }
  0xb2   :  { %1400 = vmatpush.msrb.mxu2 %v1254_v35  ;;  %1440 = vmatpush.msrb.mxu3 %v3027_v56  ;;  %v3241_v35 = vand.u32 4294901760, %v93_v17 }
  0xb3   :  { %1217 = vmatmul.f32.gmra.mxu0 %v2758_v3  ;;  %1348 = vmatpush.msrb.mxu1 %v3014_v28  ;;  %v99_v28 = vld [vmem:[#allocation5 + $0x118] sm:$0xff]  ;;  %v3698_v37 = vand.u32 4294901760, %v3190_v36  ;;  %v3692_v54 = vand.u32 4294901760, %v3252_v11  ;;  %3775 = vst [vmem:[#allocation25_spill] sm:$0xff] %v3293_v44 }
  0xb4   :  { %1318 = vmatpush.msrb.mxu0 %v3091_v63  ;;  %1404 = vmatpush.msrb.mxu2 %v1260_v41  ;;  %v3212_v59 = vand.u32 4294901760, %v99_v28  ;;  %3771 = vst [vmem:[#allocation21_spill] sm:$0xff] %v3241_v35  ;;  %v87_v63 = vld [vmem:[#allocation5 + $0xb8] sm:$0xff]  ;;  %v3254_v41 = vand.u32 4294901760, %v90_v39  ;;  %v3269_v52 = vsub.f32 %v93_v17, %v3241_v35 }
  0xb5   :  { %1442 = vmatpush.msrb.mxu3 %v3040_v12  ;;  %1134 = vmatmul.f32.gmra.mxu2 %v2647_v22  ;;  %v1542_v17 = vsub.f32 %v3252_v11, %v3692_v54  ;;  %v72_v54 = vld [vmem:[#allocation5 + $0x40] sm:$0xff] }
  0xb6   :  { %1321 = vmatpush.msrb.mxu0 %v3106_v60  ;;  %1350 = vmatpush.msrb.mxu1 %v3027_v56  ;;  %v3210_v56 = vsub.f32 %v105_v1, %v3192_v46  ;;  %v3234_v14 = vsub.f32 %v99_v28, %v3212_v59  ;;  %3772 = vst [vmem:[#allocation22_spill] sm:$0xff] %v3254_v41  ;;  %v3694_v9 = vand.u32 4294901760, %v3269_v52  ;;  %v3297_v28 = vld [vmem:[#allocation7] sm:$0x7] }
  0xb7   :  { %1408 = vmatpush.msrb.mxu2 %v1266_v6  ;;  %1444 = vmatpush.msrb.mxu3 %v3054_v38  ;;  %v3261_v6 = vand.u32 4294901760, %v87_v63  ;;  %3776 = vst [vmem:[#allocation26_spill] sm:$0xff] %v3297_v28 }
  0xb8   :  { %1175 = vmatmul.f32.gmra.mxu3 %v2647_v22  ;;  %1324 = vmatpush.msrb.mxu0 %v3117_v18  ;;  %v3696_v8 = vand.u32 4294901760, %v3210_v56  ;;  %v3693_v53 = vand.u32 4294901760, %v3234_v14  ;;  %v84_v18 = vld [vmem:[#allocation5 + $0xa0] sm:$0xff] }
  0xb9   :  { %1352 = vmatpush.msrb.mxu1 %v3040_v12  ;;  %1412 = vmatpush.msrb.mxu2 %v1272_v62  ;;  %v3221_v12 = vsub.f32 %v102_v25, %v3202_v20  ;;  %3773 = vst [vmem:[#allocation23_spill] sm:$0xff] %v3261_v6  ;;  %v3281_v40 = vand.u32 4294901760, %v84_v18  ;;  %v3289_v48 = vsub.f32 %v87_v63, %v3261_v6  ;;  %v75_v25 = vld [vmem:[#allocation5 + $0x58] sm:$0xff] }
  0xba   :  { %1446 = vmatpush.msrb.mxu3 %v3065_v13  ;;  %1287 = vmatmul.f32.gmra.mxu1 %v2697_v34  ;;  %v1524_v32 = vsub.f32 %v3210_v56, %v3696_v8  ;;  %v1536_v7 = vsub.f32 %v3234_v14, %v3693_v53  ;;  %v1543_v53 = vand.u32 4294901760, %v1542_v17  ;;  %v69_v8 = vld [vmem:[#allocation5 + $0x28] sm:$0xff]  ;;  %v3342_v17 = vand.u32 4294901760, %v72_v54 }
  0xbb   :  { %1461 = vmatpush.msra.mxu0 %v3176_v2  ;;  %1354 = vmatpush.msrb.mxu1 %v3054_v38  ;;  %v1512_v38 = vsub.f32 %v3190_v36, %v3698_v37  ;;  %v3695_v0 = vand.u32 4294901760, %v3221_v12  ;;  %3774 = vst [vmem:[#allocation24_spill] sm:$0xff] %v3281_v40  ;;  %v135_v37 = vld [vmem:[#allocation5 + $0x238] sm:$0xff] }
  0xbc   :  { %1416 = vmatpush.msrb.mxu2 %v1278_v33  ;;  %1448 = vmatpush.msrb.mxu3 %v3084_v21  ;;  %v3279_v33 = vsub.f32 %v90_v39, %v3254_v41  ;;  %v1525_v47 = vand.u32 4294901760, %v1524_v32  ;;  %v3309_v39 = vand.u32 4294901760, %v78_v29  ;;  %3781 = vst [vmem:[#allocation31_spill] sm:$0xff] %v3342_v17 }
  0xbd   :  { %1463 = vmatpush.msra.mxu0 %v3183_v43  ;;  %1356 = vmatpush.msrb.mxu1 %v3065_v13  ;;  %v3237_v57 = vpop.f32.mrf.mxu2  ;;  %v1518_v13 = vsub.f32 %v3200_v19, %v3697_v55  ;;  %v1513_v60 = vand.u32 4294901760, %v1512_v38  ;;  %v1530_v31 = vsub.f32 %v3221_v12, %v3695_v0  ;;  %v3307_v38 = vsub.f32 %v84_v18, %v3281_v40  ;;  %v138_v55 = vld [vmem:[#allocation5 + $0x250] sm:$0xff] }
  0xbe   :  { %1616 = vmatpush.msra.mxu2 %v3190_v36  ;;  %1327 = vmatmul.f32.vlgmr.msrb.gmra.mxu0 %v2665_v49  ;;  %3777 = vst [vmem:[#allocation27_spill] sm:$0xff] %v3309_v39  ;;  %v3699_v63 = vand.u32 4294901760, %v3279_v33  ;;  %v1548_v18 = vsub.f32 %v3269_v52, %v3694_v9  ;;  %v3334_v9 = vsub.f32 %v78_v29, %v3309_v39 }
  0xbf   :  { %1450 = vmatpush.msrb.mxu3 %v3098_v26  ;;  %1418 = vmatmul.f32.vlgmr.msrb.gmra.mxu2 %v2639_v23  ;;  %v1519_v62 = vand.u32 4294901760, %v1518_v13  ;;  %v1531_v1 = vand.u32 4294901760, %v1530_v31  ;;  %v1537_v13 = vand.u32 4294901760, %v1536_v7  ;;  %v3322_v31 = vand.u32 4294901760, %v75_v25 }
  0xc0   :  { %1465 = vmatpush.msra.mxu0 %v3192_v46  ;;  %1619 = vmatpush.msra.mxu2 %v3200_v19  ;;  %3780 = vst [vmem:[#allocation30_spill] sm:$0xff] %v3334_v9  ;;  %v1549_v29 = vand.u32 4294901760, %v1548_v18  ;;  %v129_v18 = vld [vmem:[#allocation5 + $0x208] sm:$0xff] }
  0xc1   :  { %1674 = vmatpush.msra.mxu3 %v3176_v2  ;;  %1358 = vmatpush.msrb.mxu1 %v3084_v21  ;;  %v3264_v21 = vpop.f32.mrf.mxu3  ;;  %3779 = vst [vmem:[#allocation29_spill] sm:$0xff] %v3322_v31 }
  0xc2   :  { %1452 = vmatmul.f32.vlgmr.msrb.gmra.mxu3 %v2639_v23  ;;  %1467 = vmatpush.msra.mxu0 %v3202_v20 }
  0xc3   :  { %1622 = vmatpush.msra.mxu2 %v3210_v56  ;;  %1676 = vmatpush.msra.mxu3 %v3183_v43 }
  0xc4   :  { %1360 = vmatpush.msrb.mxu1 %v3098_v26  ;;  %1469 = vmatpush.msra.mxu0 %v3212_v59  ;;  %v192_v26 = vpop.f32.mrf.mxu0 }
  0xc5   :  { %1364 = vmatmul.f32.vlgmr.msrb.gmra.mxu1 %v2686_v27  ;;  %1625 = vmatpush.msra.mxu2 %v3221_v12  ;;  %v3299_v42 = vpop.f32.mrf.mxu2  ;;  %v3353_v27 = vand.u32 4294901760, %v138_v55 }
  0xc6   :  { %1514 = vmatpush.msra.mxu1 %v1513_v60  ;;  %1678 = vmatpush.msra.mxu3 %v3192_v46  ;;  %v3704_v60 = vand.u32 4294901760, %v3289_v48 }
  0xc7   :  { %1471 = vmatpush.msra.mxu0 %v3226_v50  ;;  %1628 = vmatpush.msra.mxu2 %v3234_v14 }
  0xc8   :  { %1520 = vmatpush.msra.mxu1 %v1519_v62  ;;  %1680 = vmatpush.msra.mxu3 %v3202_v20  ;;  %v3320_v62 = vsub.f32 %v81_v15, %v3293_v44  ;;  %v1554_v15 = vsub.f32 %v3279_v33, %v3699_v63  ;;  %v3346_v63 = vsub.f32 %v75_v25, %v3322_v31  ;;  %v3782_v25 = vand.u32 4294901760, %v3307_v38 }
  0xc9   :  { %1332 = vmatmul.f32.gmra.mxu0 %v2713_v10  ;;  %1422 = vmatmul.f32.gmra.mxu2 %v2697_v34  ;;  %v301_v32 = vpop.f32.mrf.mxu1  ;;  %v3327_v7 = vpop.f32.mrf.mxu3 }
  0xca   :  { %1473 = vmatpush.msra.mxu0 %v3241_v35  ;;  %1526 = vmatpush.msra.mxu1 %v1525_v47  ;;  %3778 = vst [vmem:[#allocation28_spill] sm:$0xff] %v3320_v62  ;;  %v141_v47 = vperm.slane %v3297_v28, 0  ;;  %v3360_v28 = vand.u32 4294901760, %v135_v37 }
  0xcb   :  { %1631 = vmatpush.msra.mxu2 %v3252_v11  ;;  %1682 = vmatpush.msra.mxu3 %v3212_v59 }
  0xcc   :  { %1456 = vmatmul.f32.gmra.mxu3 %v2697_v34  ;;  %1475 = vmatpush.msra.mxu0 %v3254_v41  ;;  %v193_v0 = vadd.f32 %v192_v26, %v141_v47  ;;  %v200_v10 = vpop.f32.mrf.mxu0  ;;  %v1566_v26 = vsub.f32 %v3307_v38, %v3782_v25  ;;  %v3365_v34 = vsub.f32 %v72_v54, %v3342_v17 }
  0xcd   :  { %1532 = vmatpush.msra.mxu1 %v1531_v1  ;;  %1634 = vmatpush.msra.mxu2 %v3269_v52  ;;  %v1560_v1 = vsub.f32 %v3289_v48, %v3704_v60  ;;  %v66_v60 = vld [vmem:[#allocation5 + $0x10] sm:$0xff] }
  0xce   :  { %1684 = vmatpush.msra.mxu3 %v3226_v50  ;;  %1370 = vmatmul.f32.gmra.mxu1 %v2728_v58  ;;  %v3351_v58 = vand.u32 4294901760, %v69_v8  ;;  %v3373_v25 = vand.u32 4294901760, %v66_v60  ;;  %v302_v23 = vadd.f32 %v301_v32, %v193_v0  ;;  %v3389_v32 = vsub.f32 %v135_v37, %v3360_v28 }
  0xcf   :  { %1477 = vmatpush.msra.mxu0 %v3261_v6  ;;  %1538 = vmatpush.msra.mxu1 %v1537_v13  ;;  %v1555_v13 = vand.u32 4294901760, %v1554_v15  ;;  %v1561_v49 = vand.u32 4294901760, %v1560_v1  ;;  %v3367_v3 = vpop.f32.mrf.mxu2  ;;  %v3382_v1 = vsub.f32 %v138_v55, %v3353_v27  ;;  %v3721_v55 = vand.u32 4294901760, %v3365_v34 }
  0xd0   :  { %1637 = vmatpush.msra.mxu2 %v3279_v33  ;;  %1686 = vmatpush.msra.mxu3 %v3241_v35  ;;  %3784 = vst [vmem:[#allocation32_spill] sm:$0xff] %v3373_v25  ;;  %v3379_v54 = vsub.f32 %v69_v8, %v3351_v58  ;;  %v201_v8 = vadd.f32 %v200_v10, %v141_v47  ;;  %v126_v35 = vld [vmem:[#allocation5 + $0x1f0] sm:$0xff]  ;;  %v3787_v37 = vand.u32 4294901760, %v3346_v63 }
  0xd1   :  { %1479 = vmatpush.msra.mxu0 %v3281_v40  ;;  %1544 = vmatpush.msra.mxu1 %v1543_v53  ;;  %v3783_v53 = vand.u32 4294901760, %v3320_v62  ;;  %v3409_v10 = vand.u32 4294901760, %v3382_v1 }
  0xd2   :  { %1640 = vmatpush.msra.mxu2 %v3289_v48  ;;  %1688 = vmatpush.msra.mxu3 %v3254_v41  ;;  %3785 = vst [vmem:[#allocation33_spill] sm:$0xff] %v3379_v54  ;;  %v3786_v41 = vand.u32 4294901760, %v3334_v9 }
  0xd3   :  { %1481 = vmatpush.msra.mxu0 %v3293_v44  ;;  %1550 = vmatpush.msra.mxu1 %v1549_v29  ;;  %v1572_v15 = vsub.f32 %v3320_v62, %v3783_v53  ;;  %v305_v29 = vpop.f32.mrf.mxu1  ;;  %v1567_v53 = vand.u32 4294901760, %v1566_v26  ;;  %v1584_v26 = vsub.f32 %v3346_v63, %v3787_v37  ;;  %3788 = vst [vmem:[#allocation34_spill] sm:$0xff] %v3409_v10  ;;  %v3418_v37 = vand.u32 4294901760, %v126_v35 }
  0xd4   :  { %1643 = vmatpush.msra.mxu2 %v3307_v38  ;;  %1690 = vmatpush.msra.mxu3 %v3261_v6  ;;  %v1578_v0 = vsub.f32 %v3334_v9, %v3786_v41  ;;  %v3394_v6 = vand.u32 4294901760, %v132_v51 }
  0xd5   :  { %1483 = vmatpush.msra.mxu0 %v3309_v39  ;;  %1556 = vmatpush.msra.mxu1 %v1555_v13  ;;  %v3396_v13 = vpop.f32.mrf.mxu3  ;;  %v1573_v41 = vand.u32 4294901760, %v1572_v15 }
  0xd6   :  { %1646 = vmatpush.msra.mxu2 %v3320_v62  ;;  %1692 = vmatpush.msra.mxu3 %v3281_v40  ;;  %v3403_v62 = vsub.f32 %v66_v60, %v3373_v25  ;;  %v360_v40 = vadd.f32 %v3237_v57, %v302_v23  ;;  %v1579_v15 = vand.u32 4294901760, %v1578_v0  ;;  %v3416_v60 = vand.u32 4294901760, %v3389_v32  ;;  %v478_v23 = vpop.f32.mrf.mxu0 }
  0xd7   :  { %1485 = vmatpush.msra.mxu0 %v3322_v31  ;;  %1562 = vmatpush.msra.mxu1 %v1561_v49  ;;  %v3412_v49 = vand.u32 4294901760, %v129_v18  ;;  %v1590_v57 = vsub.f32 %v3365_v34, %v3721_v55  ;;  %v3426_v47 = vsub.f32 %v132_v51, %v3394_v6  ;;  %v1585_v0 = vand.u32 4294901760, %v1584_v26 }
  0xd8   :  { %1649 = vmatpush.msra.mxu2 %v3334_v9  ;;  %1694 = vmatpush.msra.mxu3 %v3293_v44  ;;  %3789 = vst [vmem:[#allocation35_spill] sm:$0xff] %v3416_v60  ;;  %v306_v44 = vadd.f32 %v305_v29, %v201_v8  ;;  %v404_v50 = vadd.f32 %v3264_v21, %v360_v40  ;;  %v3790_v51 = vand.u32 4294901760, %v3379_v54 }
  0xd9   :  { %1487 = vmatpush.msra.mxu0 %v3342_v17  ;;  %1568 = vmatpush.msra.mxu1 %v1567_v53  ;;  %v123_v53 = vld [vmem:[#allocation5 + $0x1d8] sm:$0xff]  ;;  %v1884_v55 = vsub.f32 %v3382_v1, %v3409_v10  ;;  %v3439_v8 = vsub.f32 %v129_v18, %v3412_v49  ;;  %v1890_v21 = vsub.f32 %v3389_v32, %v3416_v60  ;;  %v120_v10 = vld [vmem:[#allocation5 + $0x1c0] sm:$0xff]  ;;  %v1591_v18 = vand.u32 4294901760, %v1590_v57 }
  0xda   :  { %1652 = vmatpush.msra.mxu2 %v3346_v63  ;;  %1696 = vmatpush.msra.mxu3 %v3309_v39  ;;  %v1596_v29 = vsub.f32 %v3379_v54, %v3790_v51  ;;  %v479_v40 = vadd.f32 %v478_v23, %v404_v50  ;;  %v3446_v26 = vand.u32 4294901760, %v123_v53  ;;  %v3449_v9 = vsub.f32 %v126_v35, %v3418_v37  ;;  %v117_v23 = vld [vmem:[#allocation5 + $0x1a8] sm:$0xff] }
  0xdb   :  { %1489 = vmatpush.msra.mxu0 %v3351_v58  ;;  %1574 = vmatpush.msra.mxu1 %v1573_v41  ;;  %v3441_v41 = vpop.f32.mrf.mxu2  ;;  %v3454_v51 = vand.u32 4294901760, %v3426_v47  ;;  %v3792_v60 = vand.u32 4294901760, %v3190_v36  ;;  %v3793_v50 = vand.u32 4294901760, %v3403_v62  ;;  %v1885_v57 = vand.u32 4294901760, %v1884_v55  ;;  %v114_v55 = vld [vmem:[#allocation5 + $0x190] sm:$0xff] }
  0xdc   :  { %1655 = vmatpush.msra.mxu2 %v3365_v34  ;;  %1698 = vmatpush.msra.mxu3 %v3322_v31 }
  0xdd   :  { %1491 = vmatpush.msra.mxu0 %v3373_v25  ;;  %1580 = vmatpush.msra.mxu1 %v1579_v15  ;;  %3791 = vst [vmem:[#allocation36_spill] sm:$0xff] %v3454_v51  ;;  %v365_v15 = vadd.f32 %v3299_v42, %v306_v44  ;;  %v1602_v35 = vsub.f32 %v3403_v62, %v3793_v50  ;;  %v3467_v44 = vand.u32 4294901760, %v120_v10  ;;  %v3469_v36 = vpop.f32.mrf.mxu3  ;;  %v3794_v42 = vand.u32 4294901760, %v3200_v19 }
  0xde   :  { %1658 = vmatpush.msra.mxu2 %v3379_v54  ;;  %1700 = vmatpush.msra.mxu3 %v3342_v17  ;;  %v519_v31 = vpop.f32.mrf.mxu1  ;;  %v1597_v17 = vand.u32 4294901760, %v1596_v29  ;;  %v3465_v54 = vand.u32 4294901760, %v3439_v8  ;;  %v1896_v29 = vsub.f32 %v3426_v47, %v3454_v51  ;;  %v3495_v51 = vand.u32 4294901760, %v114_v55 }
  0xdf   :  { %1721 = vmatpush.msrb.mxu0 %v3792_v60  ;;  %1586 = vmatpush.msra.mxu1 %v1585_v0  ;;  %v520_v39 = vadd.f32 %v519_v31, %v479_v40  ;;  %v1891_v60 = vand.u32 4294901760, %v1890_v21  ;;  %v3475_v31 = vand.u32 4294901760, %v3449_v9  ;;  %v3478_v0 = vsub.f32 %v123_v53, %v3446_v26 }
  0xe0   :  { %1661 = vmatpush.msra.mxu2 %v3403_v62  ;;  %1702 = vmatpush.msra.mxu3 %v3351_v58  ;;  %v3483_v40 = vand.u32 4294901760, %v117_v23  ;;  %v410_v19 = vadd.f32 %v3327_v7, %v365_v15  ;;  %v3795_v21 = vand.u32 4294901760, %v3210_v56  ;;  %v1603_v53 = vand.u32 4294901760, %v1602_v35 }
  0xe1   :  { %1725 = vmatpush.msrb.mxu0 %v3794_v42  ;;  %1592 = vmatpush.msra.mxu1 %v1591_v18  ;;  %v558_v50 = vadd.f32 %v3367_v3, %v520_v39  ;;  %v482_v42 = vpop.f32.mrf.mxu0  ;;  %v1902_v18 = vsub.f32 %v3439_v8, %v3465_v54  ;;  %v3796_v3 = vand.u32 4294901760, %v3221_v12  ;;  %v1908_v56 = vsub.f32 %v3449_v9, %v3475_v31 }
  0xe2   :  { %1840 = vmatpush.msrb.mxu2 %v3353_v27  ;;  %1704 = vmatpush.msra.mxu3 %v3373_v25  ;;  %v3493_v25 = vsub.f32 %v120_v10, %v3467_v44  ;;  %v3503_v39 = vand.u32 4294901760, %v3478_v0  ;;  %v1897_v7 = vand.u32 4294901760, %v1896_v29  ;;  %v483_v10 = vadd.f32 %v482_v42, %v410_v19 }
  0xe3   :  { %1729 = vmatpush.msrb.mxu0 %v3795_v21  ;;  %1598 = vmatpush.msra.mxu1 %v1597_v17  ;;  %v3507_v17 = vsub.f32 %v117_v23, %v3483_v40  ;;  %v632_v15 = vadd.f32 %v3396_v13, %v558_v50  ;;  %v3797_v35 = vand.u32 4294901760, %v3234_v14  ;;  %v3518_v23 = vsub.f32 %v114_v55, %v3495_v51 }
  0xe4   :  { %1842 = vmatpush.msrb.mxu2 %v3360_v28  ;;  %1886 = vmatpush.msrb.mxu3 %v1885_v57  ;;  %v1903_v57 = vand.u32 4294901760, %v1902_v18  ;;  %v3798_v55 = vand.u32 4294901760, %v3252_v11  ;;  %v3800_v18 = vand.u32 4294901760, %v3279_v33 }
  0xe5   :  { %1664 = vmatmul.f32.vlgmr.msra.gmra.mxu2 %v2611_v61  ;;  %1733 = vmatpush.msrb.mxu0 %v3796_v3  ;;  %v675_v61 = vpop.f32.mrf.mxu2  ;;  %v3526_v14 = vand.u32 4294901760, %v3507_v17  ;;  %v3536_v21 = vand.u32 4294901760, %v3518_v23 }
  0xe6   :  { %1844 = vmatpush.msrb.mxu2 %v3394_v6  ;;  %1892 = vmatpush.msrb.mxu3 %v1891_v60  ;;  %v3515_v60 = vand.u32 4294901760, %v3493_v25  ;;  %v676_v13 = vadd.f32 %v675_v61, %v632_v15 }
  0xe7   :  { %1497 = vmatmul.f32.vlgmr.msra.gmra.mxu0 %v2675_v4  ;;  %1604 = vmatpush.msra.mxu1 %v1603_v53  ;;  %v523_v12 = vpop.f32.mrf.mxu1  ;;  %v1914_v4 = vsub.f32 %v3478_v0, %v3503_v39  ;;  %v712_v19 = vpop.f32.mrf.mxu3  ;;  %v3799_v53 = vand.u32 4294901760, %v3269_v52  ;;  %v1932_v52 = vsub.f32 %v3518_v23, %v3536_v21 }
  0xe8   :  { %1708 = vmatmul.f32.vlgmr.msra.gmra.mxu3 %v2636_v24  ;;  %1737 = vmatpush.msrb.mxu0 %v3797_v35  ;;  %v524_v29 = vadd.f32 %v523_v12, %v483_v10  ;;  %v1909_v24 = vand.u32 4294901760, %v1908_v56  ;;  %v1920_v50 = vsub.f32 %v3493_v25, %v3515_v60 }
  0xe9   :  { %1792 = vmatpush.msrb.mxu1 %v3176_v2  ;;  %1846 = vmatpush.msrb.mxu2 %v3412_v49  ;;  %v1915_v11 = vand.u32 4294901760, %v1914_v4  ;;  %v1933_v10 = vand.u32 4294901760, %v1932_v52 }
  0xea   :  { %1898 = vmatpush.msrb.mxu3 %v1897_v7  ;;  %1606 = vmatmul.f32.vlgmr.msra.gmra.mxu1 %v2588_v30  ;;  %v566_v2 = vadd.f32 %v3441_v41, %v524_v29  ;;  %v713_v41 = vadd.f32 %v712_v19, %v676_v13 }
  0xeb   :  { %1741 = vmatpush.msrb.mxu0 %v3798_v55  ;;  %1794 = vmatpush.msrb.mxu1 %v3183_v43  ;;  %v1926_v43 = vsub.f32 %v3507_v17, %v3526_v14  ;;  %v766_v42 = vpop.f32.mrf.mxu0  ;;  %v3811_v55 = vld [vmem:[#allocation12_spill] sm:$0xff] }
  0xec   :  { %1848 = vmatpush.msrb.mxu2 %v3418_v37  ;;  %1904 = vmatpush.msrb.mxu3 %v1903_v57  ;;  %v636_v3 = vadd.f32 %v3469_v36, %v566_v2  ;;  %v767_v7 = vadd.f32 %v766_v42, %v713_v41  ;;  %v3806_v57 = vld [vmem:[#allocation21_spill] sm:$0xff]  ;;  %v3815_v41 = vld [vmem:[#allocation24_spill] sm:$0xff] }
  0xed   :  { %1745 = vmatpush.msrb.mxu0 %v3799_v53  ;;  %1796 = vmatpush.msrb.mxu1 %v3192_v46  ;;  %v1921_v46 = vand.u32 4294901760, %v1920_v50  ;;  %v1927_v33 = vand.u32 4294901760, %v1926_v43  ;;  %v3812_v53 = vand.u32 4294901760, %v3346_v63  ;;  %v3814_v43 = vand.u32 4294901760, %v3365_v34  ;;  %v3816_v42 = vld [vmem:[#allocation33_spill] sm:$0xff] }
  0xee   :  { %1850 = vmatpush.msrb.mxu2 %v3446_v26  ;;  %1910 = vmatpush.msrb.mxu3 %v1909_v24  ;;  %v680_v56 = vpop.f32.mrf.mxu2  ;;  %v3807_v24 = vld [vmem:[#allocation17_spill] sm:$0xff]  ;;  %v3817_v63 = vand.u32 4294901760, %v3816_v42  ;;  %v3820_v34 = vand.u32 4294901760, %v3403_v62  ;;  %v3825_v62 = vld [vmem:[#allocation31_spill] sm:$0xff] }
  0xef   :  { %1669 = vmatmul.f32.gmra.mxu2 %v2669_v16  ;;  %1749 = vmatpush.msrb.mxu0 %v3800_v18  ;;  %v3801_v16 = vand.u32 4294901760, %v3289_v48  ;;  %v3818_v18 = vld [vmem:[#allocation25_spill] sm:$0xff] }
  0xf0   :  { %1798 = vmatpush.msrb.mxu1 %v3202_v20  ;;  %1852 = vmatpush.msrb.mxu2 %v3467_v44  ;;  %v681_v20 = vadd.f32 %v680_v56, %v636_v3 }
  0xf1   :  { %1916 = vmatpush.msrb.mxu3 %v1915_v11  ;;  %1505 = vmatmul.f32.gmra.mxu0 %v2716_v45  ;;  %v718_v15 = vpop.f32.mrf.mxu3  ;;  %v3802_v45 = vand.u32 4294901760, %v3307_v38  ;;  %v3808_v38 = vld [vmem:[#allocation30_spill] sm:$0xff]  ;;  %v3813_v11 = vld [vmem:[#allocation23_spill] sm:$0xff] }
  0xf2   :  { %1714 = vmatmul.f32.gmra.mxu3 %v2690_v5  ;;  %1753 = vmatpush.msrb.mxu0 %v3801_v16  ;;  %v3803_v5 = vld [vmem:[#allocation20_spill] sm:$0xff]  ;;  %v719_v35 = vadd.f32 %v718_v15, %v681_v20  ;;  %v3809_v13 = vand.u32 4294901760, %v3808_v38  ;;  %v3821_v16 = vld [vmem:[#allocation27_spill] sm:$0xff]  ;;  %v3823_v20 = vld [vmem:[#allocation29_spill] sm:$0xff] }
  0xf3   :  { %1800 = vmatpush.msrb.mxu1 %v3212_v59  ;;  %1854 = vmatpush.msrb.mxu2 %v3483_v40  ;;  %v800_v36 = vpop.f32.mrf.mxu1  ;;  %v3804_v59 = vld [vmem:[#allocation28_spill] sm:$0xff]  ;;  %v3828_v15 = vld [vmem:[#allocation13_spill] sm:$0xff] }
  0xf4   :  { %1922 = vmatpush.msrb.mxu3 %v1921_v46  ;;  %1610 = vmatmul.f32.gmra.mxu1 %v2647_v22  ;;  %v801_v61 = vadd.f32 %v800_v36, %v767_v7  ;;  %v3805_v12 = vand.u32 4294901760, %v3804_v59  ;;  %v3826_v36 = vld [vmem:[#allocation35_spill] sm:$0xff] }
  0xf5   :  { %1757 = vmatpush.msrb.mxu0 %v3802_v45  ;;  %1802 = vmatpush.msrb.mxu1 %v3803_v5  ;;  %v770_v4 = vpop.f32.mrf.mxu0  ;;  %v3829_v45 = vld [vmem:[#allocation32_spill] sm:$0xff] }
  0xf6   :  { %1856 = vmatpush.msrb.mxu2 %v3495_v51  ;;  %1928 = vmatpush.msrb.mxu3 %v1927_v33  ;;  %v2113_v48 = vmul.f32 %v801_v61, %v801_v61  ;;  %v771_v2 = vadd.f32 %v770_v4, %v719_v35  ;;  %v2137_v52 = vmul.f32 0.5, %v801_v61  ;;  %v3822_v33 = vld [vmem:[#allocation15_spill] sm:$0xff] }
  0xf7   :  { %1761 = vmatpush.msrb.mxu0 %v3805_v12  ;;  %1804 = vmatpush.msrb.mxu1 %v3806_v57 }
  0xf8   :  { %1953 = vmatpush.msra.mxu2 %v3382_v1  ;;  %1934 = vmatpush.msrb.mxu3 %v1933_v10  ;;  %v2119_v29 = vmul.f32 %v2113_v48, %v801_v61  ;;  %v3810_v1 = vld [vmem:[#allocation22_spill] sm:$0xff]  ;;  %v3827_v10 = vld [vmem:[#allocation36_spill] sm:$0xff] }
  0xf9   :  { %1862 = vmatmul.f32.vlgmr.msrb.gmra.mxu2 %v3807_v24  ;;  %1765 = vmatpush.msrb.mxu0 %v3809_v13 }
  0xfa   :  { %1997 = vmatpush.msra.mxu3 %v3353_v27  ;;  %1956 = vmatpush.msra.mxu2 %v3389_v32  ;;  %v2125_v19 = vmul.f32 0.035677407, %v2119_v29 }
  0xfb   :  { %1806 = vmatpush.msrb.mxu1 %v3810_v1  ;;  %1936 = vmatmul.f32.vlgmr.msrb.gmra.mxu3 %v3811_v55 }
  0xfc   :  { %1959 = vmatpush.msra.mxu2 %v3426_v47  ;;  %1999 = vmatpush.msra.mxu3 %v3360_v28  ;;  %2209 = vtanh.f32 %v2125_v19  ;;  %v804_v50 = vpop.f32.mrf.mxu1 }
  0xfd   :  { %1769 = vmatpush.msrb.mxu0 %v3812_v53  ;;  %1808 = vmatpush.msrb.mxu1 %v3813_v11  ;;  %v805_v32 = vadd.f32 %v804_v50, %v771_v2 }
  0xfe   :  { %1962 = vmatpush.msra.mxu2 %v3439_v8  ;;  %2001 = vmatpush.msra.mxu3 %v3394_v6  ;;  %v3819_v8 = vld [vmem:[#allocation19_spill] sm:$0xff] }
  0xff   :  { %1773 = vmatpush.msrb.mxu0 %v3814_v43  ;;  %1810 = vmatpush.msrb.mxu1 %v3815_v41  ;;  %v2116_v47 = vmul.f32 %v805_v32, %v805_v32 }
 0x100   :  { %1965 = vmatpush.msra.mxu2 %v3449_v9  ;;  %2003 = vmatpush.msra.mxu3 %v3412_v49 }
 0x101   :  { %1777 = vmatpush.msrb.mxu0 %v3817_v63  ;;  %1812 = vmatpush.msrb.mxu1 %v3818_v18  ;;  %v2122_v3 = vmul.f32 %v2116_v47, %v805_v32 }
 0x102   :  { %v2210_v46 = vpop.eup %2209  ;;  %1870 = vmatmul.f32.gmra.mxu2 %v3819_v8  ;;  %2005 = vmatpush.msra.mxu3 %v3418_v37 }
 0x103   :  { %1968 = vmatpush.msra.mxu2 %v3478_v0  ;;  %1781 = vmatpush.msrb.mxu0 %v3820_v34  ;;  %v2143_v9 = vadd.f32 1.0, %v2210_v46  ;;  %v2128_v56 = vmul.f32 0.035677407, %v2122_v3  ;;  %v3824_v0 = vld [vmem:[#allocation34_spill] sm:$0xff] }
 0x104   :  { %1814 = vmatpush.msrb.mxu1 %v3821_v16  ;;  %1783 = vmatmul.f32.vlgmr.msrb.gmra.mxu0 %v2588_v30 }
 0x105   :  { %1940 = vmatmul.f32.gmra.mxu3 %v3822_v33  ;;  %1971 = vmatpush.msra.mxu2 %v3493_v25  ;;  %v2149_v7 = vmul.f32 %v2143_v9, %v2137_v52  ;;  %2211 = vtanh.f32 %v2128_v56 }
 0x106   :  { %2007 = vmatpush.msra.mxu3 %v3446_v26  ;;  %1816 = vmatpush.msrb.mxu1 %v3823_v20 }
 0x107   :  { %2037 = vmatpush.msra.mxu0 %v3824_v0  ;;  %1974 = vmatpush.msra.mxu2 %v3507_v17  ;;  %2155 = vst [vmem:[#allocation8] sm:$0xff] %v2149_v7  ;;  %v2140_v17 = vmul.f32 0.5, %v805_v32 }
 0x108   :  { %2009 = vmatpush.msra.mxu3 %v3467_v44  ;;  %1818 = vmatpush.msrb.mxu1 %v3825_v62 }
 0x109   :  { %2041 = vmatpush.msra.mxu0 %v3826_v36  ;;  %1977 = vmatpush.msra.mxu2 %v3518_v23  ;;  %v3830_v23 = vld [vmem:[#allocation14_spill] sm:$0xff] }
 0x10a   :  { %2011 = vmatpush.msra.mxu3 %v3483_v40  ;;  %1820 = vmatpush.msrb.mxu1 %v3351_v58 }
 0x10b   :  { %v2212_v25 = vpop.eup %2211  ;;  %2183 = vmatpush.msrb.mxu2 %v3824_v0  ;;  %2045 = vmatpush.msra.mxu0 %v3827_v10 }
 0x10c   :  { %1980 = vmatmul.f32.vlgmr.msra.gmra.mxu2 %v3828_v15  ;;  %2013 = vmatpush.msra.mxu3 %v3495_v51  ;;  %v2146_v61 = vadd.f32 1.0, %v2212_v25 }
 0x10d   :  { %1822 = vmatpush.msrb.mxu1 %v3829_v45  ;;  %2184 = vmatpush.msrb.mxu2 %v3826_v36 }
 0x10e   :  { %2049 = vmatpush.msra.mxu0 %v3465_v54  ;;  %2192 = vmatpush.msrb.mxu3 %v3353_v27  ;;  %v2152_v58 = vmul.f32 %v2146_v61, %v2140_v17 }
 0x10f   :  { %1787 = vmatmul.f32.gmra.mxu0 %v2647_v22  ;;  %1824 = vmatmul.f32.vlgmr.msrb.gmra.mxu1 %v2588_v30 }
 0x110   :  { %2017 = vmatmul.f32.vlgmr.msra.gmra.mxu3 %v3830_v23  ;;  %2087 = vmatpush.msra.mxu1 %v3353_v27  ;;  %2159 = vst [vmem:[#allocation8 + $0x18] sm:$0x3] %v2152_v58  ;;  %v3831_v27 = vld [vmem:[#allocation16_spill] sm:$0xff] }
 0x111   :  { %2185 = vmatpush.msrb.mxu2 %v3827_v10  ;;  %2053 = vmatpush.msra.mxu0 %v3475_v31 }
 0x112   :  { %2193 = vmatpush.msrb.mxu3 %v3360_v28  ;;  %2089 = vmatpush.msra.mxu1 %v3360_v28  ;;  %v1012_v30 = vpop.f32.mrf.mxu0 }
 0x113   :  { %2186 = vmatpush.msrb.mxu2 %v3465_v54  ;;  %2057 = vmatpush.msra.mxu0 %v3503_v39 }
 0x114   :  { %2194 = vmatpush.msrb.mxu3 %v3394_v6  ;;  %2091 = vmatpush.msra.mxu1 %v3394_v6  ;;  %v3832_v6 = vld [vmem:[#allocation18_spill] sm:$0xff] }
 0x115   :  { %2187 = vmatpush.msrb.mxu2 %v3475_v31  ;;  %2061 = vmatpush.msra.mxu0 %v3515_v60 }
 0x116   :  { %2195 = vmatpush.msrb.mxu3 %v3412_v49  ;;  %1985 = vmatmul.f32.gmra.mxu2 %v3831_v27 }
 0x117   :  { %2093 = vmatpush.msra.mxu1 %v3412_v49  ;;  %2188 = vmatpush.msrb.mxu2 %v3503_v39 }
 0x118   :  { %2065 = vmatpush.msra.mxu0 %v3526_v14  ;;  %2196 = vmatpush.msrb.mxu3 %v3418_v37  ;;  %v1056_v28 = vpop.f32.mrf.mxu1  ;;  %v845_v54 = vpop.f32.mrf.mxu2 }
 0x119   :  { %1828 = vmatmul.f32.gmra.mxu1 %v2647_v22  ;;  %2023 = vmatmul.f32.gmra.mxu3 %v3832_v6  ;;  %v3833_v22 = vld [vmem:[#allocation26_spill] sm:$0xff] }
 0x11a   :  { %2095 = vmatpush.msra.mxu1 %v3418_v37  ;;  %2189 = vmatpush.msrb.mxu2 %v3515_v60  ;;  %v142_v49 = vperm.slane %v3833_v22, 1 }
 0x11b   :  { %2069 = vmatpush.msra.mxu0 %v3536_v21  ;;  %2197 = vmatpush.msrb.mxu3 %v3446_v26  ;;  %v954_v31 = vpop.f32.mrf.mxu3 }
 0x11c   :  { %2071 = vmatmul.f32.vlgmr.msra.gmra.mxu0 %v3811_v55  ;;  %2097 = vmatpush.msra.mxu1 %v3446_v26  ;;  %v1017_v37 = vpop.f32.mrf.mxu0  ;;  %v846_v26 = vadd.f32 %v845_v54, %v142_v49 }
 0x11d   :  { %2190 = vmatpush.msrb.mxu2 %v3526_v14  ;;  %2198 = vmatpush.msrb.mxu3 %v3467_v44 }
 0x11e   :  { %2099 = vmatpush.msra.mxu1 %v3467_v44  ;;  %v955_v60 = vadd.f32 %v954_v31, %v846_v26 }
 0x11f   :  { %2191 = vmatpush.msrb.mxu2 %v3536_v21  ;;  %2199 = vmatpush.msrb.mxu3 %v3483_v40 }
 0x120   :  { %2075 = vmatmul.f32.vlgmr.msrb.gmra.mxu2 %v3822_v33  ;;  %2101 = vmatpush.msra.mxu1 %v3483_v40  ;;  %v1013_v21 = vadd.f32 %v1012_v30, %v955_v60 }
 0x121   :  { %2200 = vmatpush.msrb.mxu3 %v3495_v51 }
 0x122   :  { %2103 = vmatpush.msra.mxu1 %v3495_v51  ;;  %2109 = vmatmul.f32.vlgmr.msrb.gmra.mxu3 %v3822_v33  ;;  %v1062_v39 = vpop.f32.mrf.mxu1  ;;  %v853_v44 = vpop.f32.mrf.mxu2  ;;  %v1057_v59 = vadd.f32 %v1056_v28, %v1013_v21 }
 0x123   :  { %2105 = vmatmul.f32.vlgmr.msra.gmra.mxu1 %v3811_v55  ;;  %v854_v48 = vadd.f32 %v853_v44, %v142_v49 }
 0x125   :  { %v958_v14 = vpop.f32.mrf.mxu3 }
 0x126   :  { %v1210_v5 = vpop.f32.mrf.mxu0  ;;  %v959_v12 = vadd.f32 %v958_v14, %v854_v48 }
 0x128   :  { %v1018_v4 = vadd.f32 %v1017_v37, %v959_v12  ;;  %v143_v37 = vperm.slane %v3833_v22, 2 }
 0x12a   :  { %v1063_v38 = vadd.f32 %v1062_v39, %v1018_v4 }
 0x12d   :  { %v1284_v35 = vpop.f32.mrf.mxu1 }
 0x12e   :  { %v1131_v40 = vpop.f32.mrf.mxu2 }
 0x12f   :  { %v1132_v57 = vadd.f32 %v1131_v40, %v1057_v59 }
 0x130   :  { %v1218_v24 = vpop.f32.mrf.mxu0 }
 0x131   :  { %v1172_v29 = vpop.f32.mrf.mxu3 }
 0x132   :  { %v1173_v51 = vadd.f32 %v1172_v29, %v1132_v57 }
 0x134   :  { %v1211_v1 = vadd.f32 %v1210_v5, %v1173_v51 }
 0x136   :  { %v1285_v50 = vadd.f32 %v1284_v35, %v1211_v1 }
 0x137   :  { %v1288_v13 = vpop.f32.mrf.mxu1 }
 0x138   :  { %v1135_v19 = vpop.f32.mrf.mxu2 }
 0x139   :  { %v1136_v55 = vadd.f32 %v1135_v19, %v1063_v38 }
 0x13b   :  { %v1176_v2 = vpop.f32.mrf.mxu3  ;;  %v1328_v53 = vpop.f32.mrf.mxu0 }
 0x13c   :  { %v1177_v11 = vadd.f32 %v1176_v2, %v1136_v55  ;;  %v1329_v32 = vadd.f32 %v1328_v53, %v1285_v50 }
 0x13e   :  { %v1219_v43 = vadd.f32 %v1218_v24, %v1177_v11 }
 0x140   :  { %v1289_v3 = vadd.f32 %v1288_v13, %v1219_v43 }
 0x142   :  { %v1365_v41 = vpop.f32.mrf.mxu1  ;;  %v1419_v47 = vpop.f32.mrf.mxu2 }
 0x143   :  { %v1366_v42 = vadd.f32 %v1365_v41, %v1329_v32 }
 0x145   :  { %v1420_v63 = vadd.f32 %v1419_v47, %v1366_v42  ;;  %v1453_v18 = vpop.f32.mrf.mxu3 }
 0x146   :  { %v1333_v46 = vpop.f32.mrf.mxu0 }
 0x147   :  { %v1454_v8 = vadd.f32 %v1453_v18, %v1420_v63  ;;  %v1334_v52 = vadd.f32 %v1333_v46, %v1289_v3 }
 0x149   :  { %v2114_v34 = vmul.f32 %v1454_v8, %v1454_v8  ;;  %v2138_v15 = vmul.f32 0.5, %v1454_v8 }
 0x14b   :  { %v2120_v9 = vmul.f32 %v2114_v34, %v1454_v8  ;;  %v1371_v56 = vpop.f32.mrf.mxu1 }
 0x14c   :  { %v1372_v16 = vadd.f32 %v1371_v56, %v1334_v52  ;;  %v1423_v33 = vpop.f32.mrf.mxu2 }
 0x14d   :  { %v2126_v7 = vmul.f32 0.035677407, %v2120_v9 }
 0x14e   :  { %v1424_v20 = vadd.f32 %v1423_v33, %v1372_v16 }
 0x14f   :  { %2213 = vtanh.f32 %v2126_v7  ;;  %v1457_v0 = vpop.f32.mrf.mxu3 }
 0x150   :  { %v1458_v62 = vadd.f32 %v1457_v0, %v1424_v20 }
 0x152   :  { %v2117_v36 = vmul.f32 %v1458_v62, %v1458_v62  ;;  %v2141_v23 = vmul.f32 0.5, %v1458_v62 }
 0x154   :  { %v2123_v25 = vmul.f32 %v2117_v36, %v1458_v62 }
 0x155   :  { %v2214_v10 = vpop.eup %2213 }
 0x156   :  { %v2144_v17 = vadd.f32 1.0, %v2214_v10  ;;  %v2129_v61 = vmul.f32 0.035677407, %v2123_v25 }
 0x158   :  { %v2150_v45 = vmul.f32 %v2144_v17, %v2138_v15  ;;  %2215 = vtanh.f32 %v2129_v61 }
 0x15a   :  { %2156 = vst [vmem:[#allocation8 + $0x8] sm:$0xff] %v2150_v45 }
 0x15e   :  { %v2216_v58 = vpop.eup %2215 }
 0x15f   :  { %v2147_v30 = vadd.f32 1.0, %v2216_v58 }
 0x161   :  { %v2153_v27 = vmul.f32 %v2147_v30, %v2141_v23 }
 0x163   :  { %2160 = vst [vmem:[#allocation8 + $0x20] sm:$0x3] %v2153_v27 }
 0x164   :  { %v1498_v31 = vpop.f32.mrf.mxu0 }
 0x165   :  { %v1499_v44 = vadd.f32 %v1498_v31, %v143_v37 }
 0x167   :  { %v1607_v26 = vpop.f32.mrf.mxu1 }
 0x168   :  { %v1665_v6 = vpop.f32.mrf.mxu2  ;;  %v1608_v21 = vadd.f32 %v1607_v26, %v1499_v44 }
 0x16a   :  { %v1666_v48 = vadd.f32 %v1665_v6, %v1608_v21 }
 0x16b   :  { %v1709_v28 = vpop.f32.mrf.mxu3 }
 0x16c   :  { %v1710_v40 = vadd.f32 %v1709_v28, %v1666_v48 }
 0x16e   :  { %v1506_v14 = vpop.f32.mrf.mxu0 }
 0x16f   :  { %v1507_v12 = vadd.f32 %v1506_v14, %v143_v37 }
 0x171   :  { %v1611_v5 = vpop.f32.mrf.mxu1 }
 0x172   :  { %v1670_v54 = vpop.f32.mrf.mxu2  ;;  %v1612_v29 = vadd.f32 %v1611_v5, %v1507_v12 }
 0x174   :  { %v1671_v38 = vadd.f32 %v1670_v54, %v1612_v29 }
 0x175   :  { %v1715_v49 = vpop.f32.mrf.mxu3 }
 0x176   :  { %v1716_v1 = vadd.f32 %v1715_v49, %v1671_v38 }
 0x17c   :  { %v1863_v39 = vpop.f32.mrf.mxu2 }
 0x17e   :  { %v1937_v60 = vpop.f32.mrf.mxu3 }
 0x181   :  { %v1784_v35 = vpop.f32.mrf.mxu0 }
 0x182   :  { %v1785_v4 = vadd.f32 %v1784_v35, %v1710_v40 }
 0x185   :  { %v1871_v59 = vpop.f32.mrf.mxu2 }
 0x188   :  { %v1941_v57 = vpop.f32.mrf.mxu3 }
 0x18c   :  { %v1825_v24 = vpop.f32.mrf.mxu1  ;;  %v1788_v19 = vpop.f32.mrf.mxu0 }
 0x18d   :  { %v1826_v51 = vadd.f32 %v1825_v24, %v1785_v4  ;;  %v1789_v50 = vadd.f32 %v1788_v19, %v1716_v1 }
 0x18f   :  { %v1864_v13 = vadd.f32 %v1863_v39, %v1826_v51  ;;  %v1981_v22 = vpop.f32.mrf.mxu2 }
 0x191   :  { %v1938_v55 = vadd.f32 %v1937_v60, %v1864_v13 }
 0x193   :  { %v2018_v2 = vpop.f32.mrf.mxu3  ;;  %v1982_v11 = vadd.f32 %v1981_v22, %v1938_v55 }
 0x195   :  { %v2019_v47 = vadd.f32 %v2018_v2, %v1982_v11 }
 0x196   :  { %v1829_v53 = vpop.f32.mrf.mxu1 }
 0x197   :  { %v1830_v32 = vadd.f32 %v1829_v53, %v1789_v50 }
 0x199   :  { %v1872_v43 = vadd.f32 %v1871_v59, %v1830_v32  ;;  %v1986_v41 = vpop.f32.mrf.mxu2  ;;  %v2072_v63 = vpop.f32.mrf.mxu0 }
 0x19a   :  { %v2073_v46 = vadd.f32 %v2072_v63, %v2019_v47 }
 0x19b   :  { %v1942_v42 = vadd.f32 %v1941_v57, %v1872_v43 }
 0x19c   :  { %v2024_v18 = vpop.f32.mrf.mxu3 }
 0x19d   :  { %v1987_v3 = vadd.f32 %v1986_v41, %v1942_v42 }
 0x19f   :  { %v2025_v52 = vadd.f32 %v2024_v18, %v1987_v3 }
 0x1a0   :  { %v2106_v8 = vpop.f32.mrf.mxu1 }
 0x1a1   :  { %v2107_v34 = vadd.f32 %v2106_v8, %v2073_v46 }
 0x1a3   :  { %v2115_v9 = vmul.f32 %v2107_v34, %v2107_v34  ;;  %v2076_v56 = vpop.f32.mrf.mxu2  ;;  %v2139_v15 = vmul.f32 0.5, %v2107_v34 }
 0x1a4   :  { %v2077_v16 = vadd.f32 %v2076_v56, %v2025_v52 }
 0x1a5   :  { %v2121_v33 = vmul.f32 %v2115_v9, %v2107_v34  ;;  %v2110_v7 = vpop.f32.mrf.mxu3 }
 0x1a6   :  { %v2111_v20 = vadd.f32 %v2110_v7, %v2077_v16 }
 0x1a7   :  { %v2127_v0 = vmul.f32 0.035677407, %v2121_v33 }
 0x1a8   :  { %v2118_v62 = vmul.f32 %v2111_v20, %v2111_v20  ;;  %v2142_v58 = vmul.f32 0.5, %v2111_v20 }
 0x1a9   :  { %2217 = vtanh.f32 %v2127_v0 }
 0x1aa   :  { %v2124_v36 = vmul.f32 %v2118_v62, %v2111_v20 }
 0x1ac   :  { %v2130_v25 = vmul.f32 0.035677407, %v2124_v36 }
 0x1ae   :  { %2219 = vtanh.f32 %v2130_v25 }
 0x1af   :  { %v2218_v10 = vpop.eup %2217 }
 0x1b0   :  { %v2145_v17 = vadd.f32 1.0, %v2218_v10 }
 0x1b2   :  { %v2151_v61 = vmul.f32 %v2145_v17, %v2139_v15 }
 0x1b4   :  { %v2220_v45 = vpop.eup %2219  ;;  %2158 = vst.msk [vmem:[#allocation8 + $0x10] sm:$0xff] %vm2157_vm1, %v2151_v61 }
 0x1b5   :  { %v2148_v23 = vadd.f32 1.0, %v2220_v45 }
 0x1b7   :  { %v2154_v30 = vmul.f32 %v2148_v23, %v2142_v58 }
 0x1b9   :  { %2162 = vst.msk [vmem:[#allocation8 + $0x28] sm:$0x3] %vm2161_vm2, %v2154_v30 }
 0x1ba   :  { %2175 = dma.vmem_to_hbm [thread:$0]  %s2168_s29, 768, %s2170_s5, [#allocation4], %s2324_s20, %s2324_s20, %s2325_s21  }
 0x1bb   :  { %2321 = dma.done.wait [#allocation4], 768  }
 0x1bc   :  { %2322 = vsyncadd [#allocation4], 4294966528 }
 0x1bd   :  { %2180 = vsyncpa [#allocation3], 1 }
 0x1be   :  { %2181 = vsyncpa [#allocation6], 1 }
 0x1bf   :  { %2182 = vsyncpa [#allocation4], 1 }

</bundles_post_ra>
